<compile_context>
chip_gen: v6e
topology: v6e:2x2x1
jax: 0.10.0
libtpu: 0.0.40
codegen_flags: <defaults>
</compile_context>

<pallas_src>
import functools

import jax
import jax.numpy as jnp
from jax import lax
from jax.experimental import pallas as pl
from jax.experimental.pallas import tpu as pltpu


_ROW_TILE = 256    # TM: row tile of the embedding matrix (>= 128 even on v5e)
_K_TARGET = 2048   # TK target: contraction tile over adjacency columns


def _round_up(x, m):
    return ((x + m - 1) // m) * m


def _pad_and_tiles(n):
    """Pad N to a multiple of the row tile and pick (TM, TK) dividing N_pad."""
    n_pad = _round_up(n, _ROW_TILE)
    tm = _ROW_TILE
    blocks = n_pad // _ROW_TILE
    best = 1
    for cand in range(1, min(_K_TARGET // _ROW_TILE, blocks) + 1):
        if blocks % cand == 0:
            best = cand
    tk = _ROW_TILE * best
    return n_pad, tm, tk


def _ngcf_layer_kernel(adj_ref, ego_k_ref, ego_row_ref, wgc_ref, wbi_ref, b_ref,
                       out_ref, side_acc):
    """One NGCF propagation layer for a row tile, K-tiled over the contraction.

    adj_ref     : (TM, TK) bf16  adjacency tile (rows i, cols k)
    ego_k_ref   : (TK, D)  bf16  ego rows feeding the contraction
    ego_row_ref : (TM, D)  bf16  ego row tile (bi-interaction; resident across k)
    wgc_ref/wbi_ref : (D, D) f32 layer weights
    b_ref       : (1, D)  f32    b_gc + b_bi
    out_ref     : (TM, D) f32    new embeddings (written only at the last k step)
    side_acc    : (TM, D) f32    VMEM accumulator for norm_adj @ ego
    """
    k = pl.program_id(1)

    @pl.when(k == 0)
    def _():
        side_acc[...] = jnp.zeros_like(side_acc)

    # side += adj_tile @ ego_tile  (bf16 MXU matmul, f32 accumulation)
    side_acc[...] += jnp.dot(adj_ref[...], ego_k_ref[...],
                             preferred_element_type=jnp.float32)

    @pl.when(k == pl.num_programs(1) - 1)
    def _():
        side = side_acc[...]                              # (TM, D) f32
        ego_rows = ego_row_ref[...].astype(jnp.float32)   # (TM, D) f32

        # sum_embeddings + bi_embeddings (+ combined bias)
        sum_emb = jnp.dot(side, wgc_ref[...],
                          preferred_element_type=jnp.float32)
        bi_emb = jnp.dot(ego_rows * side, wbi_ref[...],
                         preferred_element_type=jnp.float32)
        x = sum_emb + bi_emb + b_ref[...]

        # leaky_relu(negative_slope=0.2)
        x = jnp.where(x >= 0.0, x, 0.2 * x)

        # F.normalize(p=2, dim=1): x / max(||x||_2, eps), eps = 1e-12
        # == x * rsqrt(max(sum(x^2), eps^2))  -> rsqrt lands on the EUP slot.
        sumsq = jnp.sum(x * x, axis=1, keepdims=True)
        x = x * lax.rsqrt(jnp.maximum(sumsq, 1e-24))

        out_ref[...] = x.astype(out_ref.dtype)


def ngcf_layer(adj_bf16, ego_bf16, w_gc, w_bi, b_sum, *, tm, tk):
    """One NGCF layer: grid (rows/TM, N/TK), output f32 (N_pad, D)."""
    n_pad, d = ego_bf16.shape
    assert adj_bf16.shape == (n_pad, n_pad)
    assert n_pad % tm == 0 and n_pad % tk == 0
    grid = (n_pad // tm, n_pad // tk)

    return pl.pallas_call(
        _ngcf_layer_kernel,
        out_shape=jax.ShapeDtypeStruct((n_pad, d), jnp.float32),
        grid_spec=pltpu.PrefetchScalarGridSpec(
            num_scalar_prefetch=0,
            grid=grid,
            in_specs=[
                pl.BlockSpec((tm, tk), lambda i, k: (i, k)),   # adjacency tile (streamed)
                pl.BlockSpec((tk, d), lambda i, k: (k, 0)),    # ego contraction tile
                pl.BlockSpec((tm, d), lambda i, k: (i, 0)),    # ego row tile (resident over k)
                pl.BlockSpec((d, d), lambda i, k: (0, 0)),     # W_gc
                pl.BlockSpec((d, d), lambda i, k: (0, 0)),     # W_bi
                pl.BlockSpec((1, d), lambda i, k: (0, 0)),     # b_gc + b_bi
            ],
            out_specs=pl.BlockSpec((tm, d), lambda i, k: (i, 0)),
            scratch_shapes=[pltpu.VMEM((tm, d), jnp.float32)],
        ),
        compiler_params=pltpu.CompilerParams(
            dimension_semantics=("parallel", "arbitrary"),
            vmem_limit_bytes=48 * 1024 * 1024,
        ),
    )(adj_bf16, ego_bf16, ego_bf16, w_gc, w_bi, b_sum)


def ngcf_forward(params, norm_adj, num_users, num_layers):
    """NGCF.forward (eval mode): returns (user_final, item_final)."""
    ego = jnp.concatenate([params["user_emb"], params["item_emb"]], axis=0)
    n, d = ego.shape
    n_pad, tm, tk = _pad_and_tiles(n)

    # Zero-pad to the tile grid. Padded adjacency columns are zero, so padded
    # ego rows never contribute to real rows; padded output rows are dropped
    # after the final mean.
    pad = n_pad - n
    adj_p = jnp.pad(norm_adj, ((0, pad), (0, pad)))
    ego_p = jnp.pad(ego, ((0, pad), (0, 0)))

    # bf16 on the streamed MXU operands halves HBM traffic on the hot path.
    adj_bf16 = adj_p.astype(jnp.bfloat16)

    all_embeddings = [ego_p]
    cur = ego_p
    for k in range(num_layers):
        b_sum = (params[f"b_gc_{k}"] + params[f"b_bi_{k}"]).reshape(1, d)
        cur = ngcf_layer(adj_bf16, cur.astype(jnp.bfloat16),
                         params[f"W_gc_{k}"], params[f"W_bi_{k}"], b_sum,
                         tm=tm, tk=tk)
        all_embeddings.append(cur)

    stacked = jnp.stack(all_embeddings, axis=1)       # (N_pad, L+1, D)
    mean_emb = jnp.mean(stacked, axis=1)[:n]          # (N, D)
    return mean_emb[:num_users], mean_emb[num_users:]


def ngcf_reference(params, norm_adj, num_users, num_layers):
    """Plain-JAX reference with the same bf16 rounding of the streamed operands."""
    ego = jnp.concatenate([params["user_emb"], params["item_emb"]], axis=0)
    d = ego.shape[1]
    adj = norm_adj.astype(jnp.bfloat16).astype(jnp.float32)
    all_e = [ego]
    for k in range(num_layers):
        e_in = ego.astype(jnp.bfloat16).astype(jnp.float32)
        side = adj @ e_in
        s = side @ params[f"W_gc_{k}"] + params[f"b_gc_{k}"].reshape(1, d)
        b = (e_in * side) @ params[f"W_bi_{k}"] + params[f"b_bi_{k}"].reshape(1, d)
        x = s + b
        x = jnp.where(x >= 0.0, x, 0.2 * x)
        nrm = jnp.sqrt(jnp.sum(x * x, axis=1, keepdims=True))
        ego = x / jnp.maximum(nrm, 1e-12)
        all_e.append(ego)
    mean_emb = jnp.mean(jnp.stack(all_e, axis=1), axis=1)
    return mean_emb[:num_users], mean_emb[num_users:]


def xavier_uniform(key, shape, dtype=jnp.float32):
    fan_in, fan_out = shape[0], shape[1]
    bound = (6.0 / (fan_in + fan_out)) ** 0.5
    return jax.random.uniform(key, shape, dtype, minval=-bound, maxval=bound)


def make_norm_adj(key, num_users, num_items, dtype=jnp.float32):
    """Deterministic symmetric-normalized bipartite adjacency D^-1/2 A D^-1/2."""
    n = num_users + num_items
    r = jax.random.bernoulli(key, p=0.15, shape=(num_users, num_items)).astype(dtype)
    a = jnp.zeros((n, n), dtype)
    a = a.at[:num_users, num_users:].set(r)
    a = a.at[num_users:, :num_users].set(r.T)
    deg = jnp.sum(a, axis=1)
    d_inv_sqrt = jnp.where(deg > 0, 1.0 / jnp.sqrt(jnp.maximum(deg, 1e-12)), 0.0)
    return a * d_inv_sqrt[:, None] * d_inv_sqrt[None, :]


if __name__ == "__main__":
    num_users, num_items = 24, 40
    embed_dim = 32
    num_layers = 2
    dropout = 0.0  # eval path

    key = jax.random.PRNGKey(0)
    keys = jax.random.split(key, 3 + 2 * num_layers)

    params = {
        "user_emb": xavier_uniform(keys[0], (num_users, embed_dim)),
        "item_emb": xavier_uniform(keys[1], (num_items, embed_dim)),
    }
    for i in range(num_layers):
        params[f"W_gc_{i}"] = xavier_uniform(keys[3 + 2 * i], (embed_dim, embed_dim))
        params[f"W_bi_{i}"] = xavier_uniform(keys[4 + 2 * i], (embed_dim, embed_dim))
        params[f"b_gc_{i}"] = jnp.zeros((embed_dim,), jnp.float32)
        params[f"b_bi_{i}"] = jnp.zeros((embed_dim,), jnp.float32)

    norm_adj = make_norm_adj(keys[2], num_users, num_items)

    fwd = jax.jit(functools.partial(ngcf_forward,
                                    num_users=num_users,
                                    num_layers=num_layers))
    user_final, item_final = fwd(params, norm_adj)
    jax.block_until_ready((user_final, item_final))

    assert user_final.shape == (num_users, embed_dim)
    assert item_final.shape == (num_items, embed_dim)
    assert jnp.all(jnp.isfinite(user_final)) and jnp.all(jnp.isfinite(item_final))

    u_ref, i_ref = ngcf_reference(params, norm_adj, num_users, num_layers)
    assert jnp.allclose(user_final, u_ref, atol=2e-2, rtol=2e-2)
    assert jnp.allclose(item_final, i_ref, atol=2e-2, rtol=2e-2)

    print("KERNEL_OK")
</pallas_src>

<mosaic_0001>
module attributes {stable_mosaic.version = 11 : i64} {
  func.func @_ngcf_layer_kernel(%arg0: i32, %arg1: i32, %arg2: memref<256x256xbf16, #tpu.memory_space<vmem>>, %arg3: memref<256x32xbf16, #tpu.memory_space<vmem>>, %arg4: memref<256x32xbf16, #tpu.memory_space<vmem>>, %arg5: memref<32x32xf32, #tpu.memory_space<vmem>>, %arg6: memref<32x32xf32, #tpu.memory_space<vmem>>, %arg7: memref<1x32xf32, #tpu.memory_space<vmem>>, %arg8: memref<256x32xf32, #tpu.memory_space<vmem>>, %arg9: memref<256x32xf32, #tpu.memory_space<vmem>>) attributes {dimension_semantics = [#tpu.dimension_semantics<parallel>, #tpu.dimension_semantics<arbitrary>], iteration_bounds = array<i64: 1, 1>, scalar_prefetch = 0 : i64, scratch_operands = 1 : i64, tpu.core_type = #tpu.core_type<tc>, window_params = [{transform_indices = @transform_0, window_bounds = array<i64: 256, 256>}, {transform_indices = @transform_1, window_bounds = array<i64: 256, 32>}, {transform_indices = @transform_2, window_bounds = array<i64: 256, 32>}, {pipeline_mode = #tpu.pipeline_mode<synchronous>, transform_indices = @transform_3, window_bounds = array<i64: 32, 32>}, {pipeline_mode = #tpu.pipeline_mode<synchronous>, transform_indices = @transform_4, window_bounds = array<i64: 32, 32>}, {pipeline_mode = #tpu.pipeline_mode<synchronous>, transform_indices = @transform_5, window_bounds = array<i64: 1, 32>}, {transform_indices = @transform_6, window_bounds = array<i64: 256, 32>}]} {
    %c0_i32 = arith.constant 0 : i32
    %0 = arith.cmpi eq, %arg1, %c0_i32 : i32
    %1 = arith.extui %0 : i1 to i32
    %c0_i32_0 = arith.constant 0 : i32
    %2 = arith.cmpi ne, %1, %c0_i32_0 : i32
    scf.if %2 {
      %cst_10 = arith.constant 0.000000e+00 : f32
      %12 = vector.broadcast %cst_10 : f32 to vector<256x32xf32>
      %c0_11 = arith.constant 0 : index
      %c0_12 = arith.constant 0 : index
      %13 = vector.load %arg9[%c0_11, %c0_12] : memref<256x32xf32, #tpu.memory_space<vmem>>, vector<256x32xf32>
      tpu.vector_store %arg9[%c0_11, %c0_12], %12 {strides = array<i32>} : memref<256x32xf32, #tpu.memory_space<vmem>>, vector<256x32xf32>,
    } else {
    }
    %c0 = arith.constant 0 : index
    %c0_1 = arith.constant 0 : index
    %3 = vector.load %arg9[%c0, %c0_1] : memref<256x32xf32, #tpu.memory_space<vmem>>, vector<256x32xf32>
    %c0_2 = arith.constant 0 : index
    %c0_3 = arith.constant 0 : index
    %4 = vector.load %arg2[%c0_2, %c0_3] : memref<256x256xbf16, #tpu.memory_space<vmem>>, vector<256x256xbf16>
    %c0_4 = arith.constant 0 : index
    %c0_5 = arith.constant 0 : index
    %5 = vector.load %arg3[%c0_4, %c0_5] : memref<256x32xbf16, #tpu.memory_space<vmem>>, vector<256x32xbf16>
    %cst = arith.constant dense<0.000000e+00> : vector<256x32xf32>
    %6 = tpu.matmul %4, %5, %cst {dimension_numbers = #tpu.dot_dimension_numbers<[1], [0], [0], [1], [0, 0, 1, 1], [], []>} : vector<256x256xbf16>, vector<256x32xbf16>, vector<256x32xf32> -> vector<256x32xf32>
    %7 = arith.addf %3, %6 : vector<256x32xf32>
    %c0_6 = arith.constant 0 : index
    %c0_7 = arith.constant 0 : index
    %8 = vector.load %arg9[%c0_6, %c0_7] : memref<256x32xf32, #tpu.memory_space<vmem>>, vector<256x32xf32>
    tpu.vector_store %arg9[%c0_6, %c0_7], %7 {strides = array<i32>} : memref<256x32xf32, #tpu.memory_space<vmem>>, vector<256x32xf32>,
    %c0_i32_8 = arith.constant 0 : i32
    %9 = arith.cmpi eq, %arg1, %c0_i32_8 : i32
    %10 = arith.extui %9 : i1 to i32
    %c0_i32_9 = arith.constant 0 : i32
    %11 = arith.cmpi ne, %10, %c0_i32_9 : i32
    scf.if %11 {
      %c0_10 = arith.constant 0 : index
      %c0_11 = arith.constant 0 : index
      %12 = vector.load %arg9[%c0_10, %c0_11] : memref<256x32xf32, #tpu.memory_space<vmem>>, vector<256x32xf32>
      %c0_12 = arith.constant 0 : index
      %c0_13 = arith.constant 0 : index
      %13 = vector.load %arg4[%c0_12, %c0_13] : memref<256x32xbf16, #tpu.memory_space<vmem>>, vector<256x32xbf16>
      %14 = arith.extf %13 : vector<256x32xbf16> to vector<256x32xf32>
      %c0_14 = arith.constant 0 : index
      %c0_15 = arith.constant 0 : index
      %15 = vector.load %arg5[%c0_14, %c0_15] : memref<32x32xf32, #tpu.memory_space<vmem>>, vector<32x32xf32>
      %cst_16 = arith.constant dense<0.000000e+00> : vector<256x32xf32>
      %16 = tpu.matmul %12, %15, %cst_16 {dimension_numbers = #tpu.dot_dimension_numbers<[1], [0], [0], [1], [0, 0, 1, 1], [], []>} : vector<256x32xf32>, vector<32x32xf32>, vector<256x32xf32> -> vector<256x32xf32>
      %17 = arith.mulf %14, %12 : vector<256x32xf32>
      %c0_17 = arith.constant 0 : index
      %c0_18 = arith.constant 0 : index
      %18 = vector.load %arg6[%c0_17, %c0_18] : memref<32x32xf32, #tpu.memory_space<vmem>>, vector<32x32xf32>
      %cst_19 = arith.constant dense<0.000000e+00> : vector<256x32xf32>
      %19 = tpu.matmul %17, %18, %cst_19 {dimension_numbers = #tpu.dot_dimension_numbers<[1], [0], [0], [1], [0, 0, 1, 1], [], []>} : vector<256x32xf32>, vector<32x32xf32>, vector<256x32xf32> -> vector<256x32xf32>
      %20 = arith.addf %16, %19 : vector<256x32xf32>
      %c0_20 = arith.constant 0 : index
      %c0_21 = arith.constant 0 : index
      %21 = vector.load %arg7[%c0_20, %c0_21] : memref<1x32xf32, #tpu.memory_space<vmem>>, vector<1x32xf32>
      %22 = vector.broadcast %21 : vector<1x32xf32> to vector<256x32xf32>
      %23 = arith.addf %20, %22 : vector<256x32xf32>
      %cst_22 = arith.constant 0.000000e+00 : f32
      %24 = vector.broadcast %cst_22 : f32 to vector<256x32xf32>
      %25 = arith.cmpf oge, %23, %24 : vector<256x32xf32>
      %cst_23 = arith.constant 2.000000e-01 : f32
      %26 = vector.broadcast %cst_23 : f32 to vector<256x32xf32>
      %27 = arith.mulf %26, %23 : vector<256x32xf32>
      %28 = arith.select %25, %23, %27 : vector<256x32xi1>, vector<256x32xf32>
      %29 = arith.mulf %28, %28 : vector<256x32xf32>
      %cst_24 = arith.constant dense<0.000000e+00> : vector<256xf32>
      %30 = vector.multi_reduction <add>, %29, %cst_24 [1] : vector<256x32xf32> to vector<256xf32>
      %31 = vector.shape_cast %30 : vector<256xf32> to vector<256x1xf32>
      %cst_25 = arith.constant 1.000000e-24 : f32
      %32 = vector.broadcast %cst_25 : f32 to vector<256x1xf32>
      %33 = arith.maximumf %31, %32 : vector<256x1xf32>
      %34 = math.rsqrt %33 : vector<256x1xf32>
      %35 = vector.broadcast %34 : vector<256x1xf32> to vector<256x32xf32>
      %36 = arith.mulf %28, %35 : vector<256x32xf32>
      %c0_26 = arith.constant 0 : index
      %c0_27 = arith.constant 0 : index
      %37 = vector.load %arg8[%c0_26, %c0_27] : memref<256x32xf32, #tpu.memory_space<vmem>>, vector<256x32xf32>
      tpu.vector_store %arg8[%c0_26, %c0_27], %36 {strides = array<i32>} : memref<256x32xf32, #tpu.memory_space<vmem>>, vector<256x32xf32>,
    } else {
    }
    return
  }
  func.func @transform_0(%arg0: i32, %arg1: i32) -> (i32, i32) {
    %c0_i32 = arith.constant 0 : i32
    return %arg0, %arg1 : i32, i32
  }
  func.func @transform_1(%arg0: i32, %arg1: i32) -> (i32, i32) {
    %c0_i32 = arith.constant 0 : i32
    %c0_i32_0 = arith.constant 0 : i32
    return %arg1, %c0_i32 : i32, i32
  }
  func.func @transform_2(%arg0: i32, %arg1: i32) -> (i32, i32) {
    %c0_i32 = arith.constant 0 : i32
    %c0_i32_0 = arith.constant 0 : i32
    return %arg0, %c0_i32 : i32, i32
  }
  func.func @transform_3(%arg0: i32, %arg1: i32) -> (i32, i32) {
    %c0_i32 = arith.constant 0 : i32
    %c0_i32_0 = arith.constant 0 : i32
    %c0_i32_1 = arith.constant 0 : i32
    return %c0_i32, %c0_i32_0 : i32, i32
  }
  func.func @transform_4(%arg0: i32, %arg1: i32) -> (i32, i32) {
    %c0_i32 = arith.constant 0 : i32
    %c0_i32_0 = arith.constant 0 : i32
    %c0_i32_1 = arith.constant 0 : i32
    return %c0_i32, %c0_i32_0 : i32, i32
  }
  func.func @transform_5(%arg0: i32, %arg1: i32) -> (i32, i32) {
    %c0_i32 = arith.constant 0 : i32
    %c0_i32_0 = arith.constant 0 : i32
    %c0_i32_1 = arith.constant 0 : i32
    return %c0_i32, %c0_i32_0 : i32, i32
  }
  func.func @transform_6(%arg0: i32, %arg1: i32) -> (i32, i32) {
    %c0_i32 = arith.constant 0 : i32
    %c0_i32_0 = arith.constant 0 : i32
    return %arg0, %c0_i32 : i32, i32
  }
}

</mosaic_0001>

<bundles_post_ra>
// kernel: ngcf_forward.2
= control target key start
LH: loop header
LB: loop body
LE: loop exit
PB: predicated region body
PF: predicated region fallthrough
CT: control target
= control target key end

     0   :  { %vm28_vm0 = vcmask 261120   ;;  %v2432_v35 = vmov 0.0   ;;  %s3355_s1 = inlined_call_operand.vmem [shape: bf16[256,32], index: 1, kind: input, shape index: {}, may-alias: {1,2}]   ;;  %s3356_s0 = inlined_call_operand.vmem [shape: bf16[256,256], index: 0, kind: input, shape index: {}]   ;;  %s3357_s4 = inlined_call_operand.vmem [shape: f32[32,32], index: 4, kind: input, shape index: {}]   ;;  %s3358_s3 = inlined_call_operand.vmem [shape: f32[32,32], index: 3, kind: input, shape index: {}]   ;;  %s3359_s2 = inlined_call_operand.vmem [shape: bf16[256,32], index: 2, kind: input, shape index: {}, may-alias: {1,2}]   ;;  %s3360_s5 = inlined_call_operand.vmem [shape: f32[1,32], index: 5, kind: input, shape index: {}]   ;;  %s3361_s6 = inlined_call_operand.vmem [shape: f32[256,32], index: 6, kind: output, shape index: {}]  }
   0x1   :  { %v2304_v0 = vld [vmem:[%s3355_s1 + $0x78] sm:$0xff]   ;;  %v2306_v2 = vld [vmem:[%s3355_s1 + $0x70] sm:$0xff]   ;;  %v2308_v4 = vld [vmem:[%s3355_s1 + $0x68] sm:$0xff]   ;;  %29 = vst.msk [vmem:[#allocation2] sm:$0xff] %vm28_vm0, %v2432_v35 }
   0x2   :  { %v2305_v1 = vld [vmem:[%s3355_s1 + $0x38] sm:$0xff]   ;;  %2007 = vmatprep.subr.bf16.mxu0 %v2304_v0  ;;  %v2307_v3 = vld [vmem:[%s3355_s1 + $0x30] sm:$0xff]   ;;  %v2309_v5 = vld [vmem:[%s3355_s1 + $0x28] sm:$0xff]   ;;  %30 = vst.msk [vmem:[#allocation2 + $0x8] sm:$0xff] %vm28_vm0, %v2432_v35 }
   0x3   :  { %2008 = vmatpush3.bf16.msra.mxu0 %v2305_v1  ;;  %v2310_v6 = vld [vmem:[%s3355_s1 + $0x60] sm:$0xff]   ;;  %v2312_v8 = vld [vmem:[%s3355_s1 + $0x58] sm:$0xff]   ;;  %v2314_v10 = vld [vmem:[%s3355_s1 + $0x50] sm:$0xff]   ;;  %31 = vst.msk [vmem:[#allocation2 + $0x10] sm:$0xff] %vm28_vm0, %v2432_v35 }
   0x4   :  { %2009 = vmatprep.subr.bf16.mxu0 %v2306_v2  ;;  %v2311_v7 = vld [vmem:[%s3355_s1 + $0x20] sm:$0xff]   ;;  %v2313_v9 = vld [vmem:[%s3355_s1 + $0x18] sm:$0xff]   ;;  %v2315_v12 = vld [vmem:[%s3355_s1 + $0x10] sm:$0xff]   ;;  %32 = vst.msk [vmem:[#allocation2 + $0x18] sm:$0xff] %vm28_vm0, %v2432_v35 }
   0x5   :  { %v2322_v11 = vld [vmem:[%s3356_s0 + $0x4] ss:$8 sps:$4 sm:$0xff]   ;;  %v2320_v17 = vld [vmem:[%s3356_s0] ss:$8 sps:$4 sm:$0xff]   ;;  %v2323_v18 = vld [vmem:[%s3356_s0 + $0x14] ss:$8 sps:$4 sm:$0xff]  }
   0x6   :  { %445 = vmatprep.mubr.bf16.mxu0 %v2322_v11  ;;  %v2316_v13 = vld [vmem:[%s3355_s1 + $0x48] sm:$0xff]   ;;  %v2318_v15 = vld [vmem:[%s3355_s1 + $0x40] sm:$0xff]   ;;  %v2325_v19 = vld [vmem:[%s3356_s0 + $0x10] ss:$8 sps:$4 sm:$0xff]   ;;  %33 = vst.msk [vmem:[#allocation2 + $0x20] sm:$0xff] %vm28_vm0, %v2432_v35 }
   0x7   :  { %2010 = vmatpush3.bf16.msra.mxu0 %v2307_v3  ;;  %v2317_v14 = vld [vmem:[%s3355_s1 + $0x8] sm:$0xff]   ;;  %v2319_v16 = vld [vmem:[%s3355_s1] sm:$0xff]   ;;  %v2329_v22 = vld [vmem:[%s3356_s0 + $0x34] ss:$8 sps:$4 sm:$0xff]   ;;  %34 = vst.msk [vmem:[#allocation2 + $0x28] sm:$0xff] %vm28_vm0, %v2432_v35 }
   0x8   :  { %2011 = vmatprep.subr.bf16.mxu0 %v2308_v4  ;;  %v2326_v20 = vld [vmem:[%s3356_s0 + $0x24] ss:$8 sps:$4 sm:$0xff]   ;;  %v2328_v21 = vld [vmem:[%s3356_s0 + $0x20] ss:$8 sps:$4 sm:$0xff]   ;;  %v2331_v23 = vld [vmem:[%s3356_s0 + $0x30] ss:$8 sps:$4 sm:$0xff]  }
   0x9   :  { %v2332_v24 = vld [vmem:[%s3356_s0 + $0x44] ss:$8 sps:$4 sm:$0xff]   ;;  %v2334_v25 = vld [vmem:[%s3356_s0 + $0x40] ss:$8 sps:$4 sm:$0xff]   ;;  %v2335_v26 = vld [vmem:[%s3356_s0 + $0x54] ss:$8 sps:$4 sm:$0xff]  }
   0xa   :  { %v2337_v27 = vld [vmem:[%s3356_s0 + $0x50] ss:$8 sps:$4 sm:$0xff]   ;;  %v2338_v28 = vld [vmem:[%s3356_s0 + $0x64] ss:$8 sps:$4 sm:$0xff]   ;;  %v2340_v29 = vld [vmem:[%s3356_s0 + $0x60] ss:$8 sps:$4 sm:$0xff]  }
   0xb   :  { %2012 = vmatpush3.bf16.msra.mxu0 %v2309_v5  ;;  %v2341_v30 = vld [vmem:[%s3356_s0 + $0x74] ss:$8 sps:$4 sm:$0xff]   ;;  %v2343_v31 = vld [vmem:[%s3356_s0 + $0x70] ss:$8 sps:$4 sm:$0xff]   ;;  %v2344_v32 = vld [vmem:[%s3356_s0 + $0x84] ss:$8 sps:$4 sm:$0xff]  }
   0xc   :  { %2013 = vmatprep.subr.bf16.mxu0 %v2310_v6  ;;  %v2346_v33 = vld [vmem:[%s3356_s0 + $0x80] ss:$8 sps:$4 sm:$0xff]   ;;  %v2347_v34 = vld [vmem:[%s3356_s0 + $0x94] ss:$8 sps:$4 sm:$0xff]   ;;  %35 = vst.msk [vmem:[#allocation2 + $0x30] sm:$0xff] %vm28_vm0, %v2432_v35  ;;  %36 = vst.msk [vmem:[#allocation2 + $0x38] sm:$0xff] %vm28_vm0, %v2432_v35 }
   0xd   :  { %37 = vst.msk [vmem:[#allocation2 + $0x40] sm:$0xff] %vm28_vm0, %v2432_v35  ;;  %38 = vst.msk [vmem:[#allocation2 + $0x48] sm:$0xff] %vm28_vm0, %v2432_v35  ;;  %v2349_v36 = vld [vmem:[%s3356_s0 + $0x90] ss:$8 sps:$4 sm:$0xff]   ;;  %v2350_v37 = vld [vmem:[%s3356_s0 + $0xa4] ss:$8 sps:$4 sm:$0xff]  }
   0xe   :  { %39 = vst.msk [vmem:[#allocation2 + $0x50] sm:$0xff] %vm28_vm0, %v2432_v35  ;;  %40 = vst.msk [vmem:[#allocation2 + $0x58] sm:$0xff] %vm28_vm0, %v2432_v35  ;;  %v2352_v38 = vld [vmem:[%s3356_s0 + $0xa0] ss:$8 sps:$4 sm:$0xff]   ;;  %v777_v39 = vld [vmem:[%s3357_s4 + $0x18] sm:$0xff] }
   0xf   :  { %2014 = vmatpush3.bf16.msra.mxu0 %v2311_v7  ;;  %41 = vst.msk [vmem:[#allocation2 + $0x60] sm:$0xff] %vm28_vm0, %v2432_v35  ;;  %42 = vst.msk [vmem:[#allocation2 + $0x68] sm:$0xff] %vm28_vm0, %v2432_v35  ;;  %v2353_v40 = vld [vmem:[%s3356_s0 + $0xb4] ss:$8 sps:$4 sm:$0xff]   ;;  %2191 = vmatprep.subr.mxu1 %v777_v39  ;;  %v775_v42 = vld [vmem:[%s3357_s4 + $0x8] sm:$0xff] }
  0x10   :  { %2015 = vmatprep.subr.bf16.mxu0 %v2312_v8  ;;  %43 = vst.msk [vmem:[#allocation2 + $0x70] sm:$0xff] %vm28_vm0, %v2432_v35  ;;  %44 = vst.msk [vmem:[#allocation2 + $0x78] sm:$0xff] %vm28_vm0, %v2432_v35  ;;  %2192 = vmatpush3.msra.mxu1 %v777_v39  ;;  %v776_v41 = vld [vmem:[%s3357_s4 + $0x10] sm:$0xff]  ;;  %v774_v43 = vld [vmem:[%s3357_s4] sm:$0xff] }
  0x11   :  { %45 = vst.msk [vmem:[#allocation2 + $0x80] sm:$0xff] %vm28_vm0, %v2432_v35  ;;  %46 = vst.msk [vmem:[#allocation2 + $0x88] sm:$0xff] %vm28_vm0, %v2432_v35  ;;  %2193 = vmatprep.subr.mxu1 %v776_v41  ;;  %v2355_v44 = vld [vmem:[%s3356_s0 + $0xb0] ss:$8 sps:$4 sm:$0xff]   ;;  %v2356_v45 = vld [vmem:[%s3356_s0 + $0xc4] ss:$8 sps:$4 sm:$0xff]  }
  0x12   :  { %47 = vst.msk [vmem:[#allocation2 + $0x90] sm:$0xff] %vm28_vm0, %v2432_v35  ;;  %48 = vst.msk [vmem:[#allocation2 + $0x98] sm:$0xff] %vm28_vm0, %v2432_v35  ;;  %2194 = vmatpush3.msra.mxu1 %v776_v41  ;;  %v2358_v46 = vld [vmem:[%s3356_s0 + $0xc0] ss:$8 sps:$4 sm:$0xff]   ;;  %v2359_v47 = vld [vmem:[%s3356_s0 + $0xd4] ss:$8 sps:$4 sm:$0xff]  }
  0x13   :  { %2016 = vmatpush3.bf16.msra.mxu0 %v2313_v9  ;;  %49 = vst.msk [vmem:[#allocation2 + $0xa0] sm:$0xff] %vm28_vm0, %v2432_v35  ;;  %50 = vst.msk [vmem:[#allocation2 + $0xa8] sm:$0xff] %vm28_vm0, %v2432_v35  ;;  %2195 = vmatprep.subr.mxu1 %v775_v42  ;;  %v2361_v48 = vld [vmem:[%s3356_s0 + $0xd0] ss:$8 sps:$4 sm:$0xff]   ;;  %v2362_v49 = vld [vmem:[%s3356_s0 + $0xe4] ss:$8 sps:$4 sm:$0xff]  }
  0x14   :  { %2017 = vmatprep.subr.bf16.mxu0 %v2314_v10  ;;  %51 = vst.msk [vmem:[#allocation2 + $0xb0] sm:$0xff] %vm28_vm0, %v2432_v35  ;;  %52 = vst.msk [vmem:[#allocation2 + $0xb8] sm:$0xff] %vm28_vm0, %v2432_v35  ;;  %2196 = vmatpush3.msra.mxu1 %v775_v42  ;;  %v2364_v50 = vld [vmem:[%s3356_s0 + $0xe0] ss:$8 sps:$4 sm:$0xff]   ;;  %v2365_v51 = vld [vmem:[%s3356_s0 + $0xf4] ss:$8 sps:$4 sm:$0xff]  }
  0x15   :  { %53 = vst.msk [vmem:[#allocation2 + $0xc0] sm:$0xff] %vm28_vm0, %v2432_v35  ;;  %54 = vst.msk [vmem:[#allocation2 + $0xc8] sm:$0xff] %vm28_vm0, %v2432_v35  ;;  %2197 = vmatprep.subr.mxu1 %v774_v43  ;;  %v2367_v52 = vld [vmem:[%s3356_s0 + $0xf0] ss:$8 sps:$4 sm:$0xff]   ;;  %v61_v55 = vld [vmem:[#allocation2] sm:$0xff] }
  0x16   :  { %55 = vst.msk [vmem:[#allocation2 + $0xd0] sm:$0xff] %vm28_vm0, %v2432_v35  ;;  %56 = vst.msk [vmem:[#allocation2 + $0xd8] sm:$0xff] %vm28_vm0, %v2432_v35  ;;  %2198 = vmatpush3.msra.mxu1 %v774_v43  ;;  %v741_v53 = vld [vmem:[%s3358_s3 + $0x18] sm:$0xff]  ;;  %v62_v60 = vld [vmem:[#allocation2 + $0x8] sm:$0xff] }
  0x17   :  { %2018 = vmatpush3.bf16.msra.mxu0 %v2315_v12  ;;  %57 = vst.msk [vmem:[#allocation2 + $0xe0] sm:$0xff] %vm28_vm0, %v2432_v35  ;;  %58 = vst.msk [vmem:[#allocation2 + $0xe8] sm:$0xff] %vm28_vm0, %v2432_v35  ;;  %2247 = vmatprep.subr.mxu1 %v741_v53  ;;  %v1929_v0 = vld [vmem:[%s3359_s2] sm:$0xff]   ;;  %v63_v2 = vld [vmem:[#allocation2 + $0x10] sm:$0xff] }
  0x18   :  { %2019 = vmatprep.subr.bf16.mxu0 %v2316_v13  ;;  %59 = vst.msk [vmem:[#allocation2 + $0xf0] sm:$0xff] %vm28_vm0, %v2432_v35  ;;  %60 = vst.msk [vmem:[#allocation2 + $0xf8] sm:$0xff] %vm28_vm0, %v2432_v35  ;;  %v1930_v5 = vunpack.c.l.bf16 %v1929_v0  ;;  %v64_v8 = vld [vmem:[#allocation2 + $0x18] sm:$0xff]  ;;  %v1931_v12 = vunpack.c.h.bf16 %v1929_v0  ;;  %v738_v35 = vld [vmem:[%s3358_s3] sm:$0xff] }
  0x1b   :  { %2020 = vmatpush3.bf16.msra.mxu0 %v2317_v14 }
  0x1c   :  { %2021 = vmatprep.subr.bf16.mxu0 %v2318_v15  ;;  %v1992_v15 = vld [vmem:[%s3359_s2 + $0x8] sm:$0xff]  }
  0x1f   :  { %2022 = vmatpush3.bf16.msra.mxu0 %v2319_v16 }
  0x22   :  { %446 = vmatmul.mubr.bf16.vlgmr.msra.gmra.mxu0 %v2320_v17  ;;  %v65_v17 = vld [vmem:[#allocation2 + $0x20] sm:$0xff] }
  0x23   :  { %453 = vmatprep.mubr.bf16.mxu0 %v2323_v18 }
  0x2a   :  { %454 = vmatmul.mubr.bf16.gmra.mxu0 %v2325_v19 }
  0x2b   :  { %461 = vmatprep.mubr.bf16.mxu0 %v2326_v20 }
  0x32   :  { %462 = vmatmul.mubr.bf16.gmra.mxu0 %v2328_v21 }
  0x33   :  { %469 = vmatprep.mubr.bf16.mxu0 %v2329_v22  ;;  %v1934_v22 = vunpack.c.l.bf16 %v1992_v15 }
  0x3a   :  { %470 = vmatmul.mubr.bf16.gmra.mxu0 %v2331_v23 }
  0x3b   :  { %477 = vmatprep.mubr.bf16.mxu0 %v2332_v24  ;;  %v740_v24 = vld [vmem:[%s3358_s3 + $0x10] sm:$0xff] }
  0x42   :  { %478 = vmatmul.mubr.bf16.gmra.mxu0 %v2334_v25 }
  0x43   :  { %485 = vmatprep.mubr.bf16.mxu0 %v2335_v26  ;;  %v66_v26 = vld [vmem:[#allocation2 + $0x28] sm:$0xff] }
  0x4a   :  { %486 = vmatmul.mubr.bf16.gmra.mxu0 %v2337_v27 }
  0x4b   :  { %493 = vmatprep.mubr.bf16.mxu0 %v2338_v28 }
  0x52   :  { %494 = vmatmul.mubr.bf16.gmra.mxu0 %v2340_v29  ;;  %v739_v29 = vld [vmem:[%s3358_s3 + $0x8] sm:$0xff] }
  0x53   :  { %501 = vmatprep.mubr.bf16.mxu0 %v2341_v30 }
  0x5a   :  { %502 = vmatmul.mubr.bf16.gmra.mxu0 %v2343_v31 }
  0x5b   :  { %509 = vmatprep.mubr.bf16.mxu0 %v2344_v32  ;;  %v1935_v32 = vunpack.c.h.bf16 %v1992_v15 }
  0x62   :  { %510 = vmatmul.mubr.bf16.gmra.mxu0 %v2346_v33 }
  0x63   :  { %517 = vmatprep.mubr.bf16.mxu0 %v2347_v34  ;;  %v1993_v34 = vld [vmem:[%s3359_s2 + $0x10] sm:$0xff]  }
  0x64   :  { %v1938_v42 = vunpack.c.l.bf16 %v1993_v34 }
  0x6a   :  { %518 = vmatmul.mubr.bf16.gmra.mxu0 %v2349_v36 }
  0x6b   :  { %525 = vmatprep.mubr.bf16.mxu0 %v2350_v37  ;;  %v67_v37 = vld [vmem:[#allocation2 + $0x30] sm:$0xff] }
  0x72   :  { %526 = vmatmul.mubr.bf16.gmra.mxu0 %v2352_v38 }
  0x73   :  { %533 = vmatprep.mubr.bf16.mxu0 %v2353_v40 }
  0x7a   :  { %534 = vmatmul.mubr.bf16.gmra.mxu0 %v2355_v44 }
  0x7b   :  { %541 = vmatprep.mubr.bf16.mxu0 %v2356_v45  ;;  %v68_v45 = vld [vmem:[#allocation2 + $0x38] sm:$0xff] }
  0x82   :  { %542 = vmatmul.mubr.bf16.gmra.mxu0 %v2358_v46 }
  0x83   :  { %549 = vmatprep.mubr.bf16.mxu0 %v2359_v47 }
  0x8a   :  { %550 = vmatmul.mubr.bf16.gmra.mxu0 %v2361_v48 }
  0x8b   :  { %557 = vmatprep.mubr.bf16.mxu0 %v2362_v49 }
  0x92   :  { %558 = vmatmul.mubr.bf16.gmra.mxu0 %v2364_v50  ;;  %v1939_v50 = vunpack.c.h.bf16 %v1993_v34 }
  0x93   :  { %565 = vmatprep.mubr.bf16.mxu0 %v2365_v51 }
  0x9a   :  { %566 = vmatmul.mubr.bf16.gmra.mxu0 %v2367_v52  ;;  %v1994_v52 = vld [vmem:[%s3359_s2 + $0x18] sm:$0xff]  }
  0xe2   :  { %v2023_v54 = vpop.f32.mrf.mxu0 }
  0xe4   :  { %v2024_v56 = vpop.f32.mrf.mxu0 }
  0xe5   :  { %v2025_v57 = vadd.f32 %v2024_v56, %v2023_v54  ;;  %v69_v54 = vld [vmem:[#allocation2 + $0x40] sm:$0xff] }
  0xe6   :  { %v2026_v58 = vpop.f32.mrf.mxu0 }
  0xe7   :  { %v574_v59 = vadd.f32 %v2025_v57, %v61_v55 }
  0xe8   :  { %v2027_v61 = vpop.f32.mrf.mxu0 }
  0xe9   :  { %607 = vst.msk [vmem:[#allocation2] sm:$0xff] %vm28_vm0, %v574_v59  ;;  %v2028_v62 = vadd.f32 %v2027_v61, %v2026_v58  ;;  %v1942_v59 = vunpack.c.l.bf16 %v1994_v52 }
  0xea   :  { %v2029_v63 = vpop.f32.mrf.mxu0 }
  0xeb   :  { %v575_v1 = vadd.f32 %v2028_v62, %v62_v60  ;;  %v70_v62 = vld [vmem:[#allocation2 + $0x48] sm:$0xff] }
  0xec   :  { %v2030_v3 = vpop.f32.mrf.mxu0 }
  0xed   :  { %608 = vst.msk [vmem:[#allocation2 + $0x8] sm:$0xff] %vm28_vm0, %v575_v1  ;;  %v2031_v4 = vadd.f32 %v2030_v3, %v2029_v63  ;;  %v1943_v3 = vunpack.c.h.bf16 %v1994_v52 }
  0xee   :  { %v2032_v6 = vpop.f32.mrf.mxu0 }
  0xef   :  { %v576_v7 = vadd.f32 %v2031_v4, %v63_v2 }
  0xf0   :  { %v2033_v9 = vpop.f32.mrf.mxu0  ;;  %v2664_v10 = vld [vmem:[#allocation2] sm:$0xff] }
  0xf1   :  { %609 = vst.msk [vmem:[#allocation2 + $0x10] sm:$0xff] %vm28_vm0, %v576_v7  ;;  %v2034_v11 = vadd.f32 %v2033_v9, %v2032_v6  ;;  %v742_v13 = vmul.f32 %v1930_v5, %v2664_v10  ;;  %v1995_v5 = vld [vmem:[%s3359_s2 + $0x20] sm:$0xff]   ;;  %v71_v7 = vld [vmem:[#allocation2 + $0x50] sm:$0xff] }
  0xf2   :  { %v2035_v14 = vpop.f32.mrf.mxu0 }
  0xf3   :  { %v577_v16 = vadd.f32 %v2034_v11, %v64_v8  ;;  %2199 = vmatprep.mubr.msk.f32.mxu1 %vm28_vm0, %v742_v13  ;;  %v1946_v13 = vunpack.c.l.bf16 %v1995_v5 }
  0xf4   :  { %v2036_v18 = vpop.f32.mrf.mxu0  ;;  %v2672_v19 = vld [vmem:[#allocation2 + $0x8] sm:$0xff] }
  0xf5   :  { %610 = vst.msk [vmem:[#allocation2 + $0x18] sm:$0xff] %vm28_vm0, %v577_v16  ;;  %v2037_v20 = vadd.f32 %v2036_v18, %v2035_v14  ;;  %v743_v21 = vmul.f32 %v1931_v12, %v2672_v19  ;;  %v72_v16 = vld [vmem:[#allocation2 + $0x58] sm:$0xff] }
  0xf6   :  { %v2038_v23 = vpop.f32.mrf.mxu0 }
  0xf7   :  { %v578_v25 = vadd.f32 %v2037_v20, %v65_v17  ;;  %2200 = vmatmul.mubr.msk.f32.vlgmr.msra.gmra.mxu1 %vm28_vm0, %v743_v21 }
  0xf8   :  { %v2039_v27 = vpop.f32.mrf.mxu0  ;;  %v2680_v28 = vld [vmem:[#allocation2 + $0x10] sm:$0xff]  ;;  %2248 = vmatpush3.msra.mxu1 %v741_v53 }
  0xf9   :  { %611 = vst.msk [vmem:[#allocation2 + $0x20] sm:$0xff] %vm28_vm0, %v578_v25  ;;  %v2040_v30 = vadd.f32 %v2039_v27, %v2038_v23  ;;  %v744_v31 = vmul.f32 %v1934_v22, %v2680_v28  ;;  %2249 = vmatprep.subr.mxu1 %v740_v24  ;;  %v1947_v22 = vunpack.c.h.bf16 %v1995_v5 }
  0xfa   :  { %v2041_v33 = vpop.f32.mrf.mxu0  ;;  %2250 = vmatpush3.msra.mxu1 %v740_v24  ;;  %v1996_v24 = vld [vmem:[%s3359_s2 + $0x28] sm:$0xff]  }
  0xfb   :  { %v579_v36 = vadd.f32 %v2040_v30, %v66_v26  ;;  %2202 = vmatprep.mubr.msk.f32.mxu1 %vm28_vm0, %v744_v31  ;;  %2251 = vmatprep.subr.mxu1 %v739_v29  ;;  %v73_v26 = vld [vmem:[#allocation2 + $0x60] sm:$0xff] }
  0xfc   :  { %v2042_v38 = vpop.f32.mrf.mxu0  ;;  %v2694_v39 = vld [vmem:[#allocation2 + $0x18] sm:$0xff]  ;;  %2252 = vmatpush3.msra.mxu1 %v739_v29 }
  0xfd   :  { %612 = vst.msk [vmem:[#allocation2 + $0x28] sm:$0xff] %vm28_vm0, %v579_v36  ;;  %v2043_v40 = vadd.f32 %v2042_v38, %v2041_v33  ;;  %v745_v41 = vmul.f32 %v1935_v32, %v2694_v39  ;;  %2253 = vmatprep.subr.mxu1 %v738_v35  ;;  %v1950_v32 = vunpack.c.l.bf16 %v1996_v24 }
  0xfe   :  { %v2044_v43 = vpop.f32.mrf.mxu0  ;;  %2254 = vmatpush3.msra.mxu1 %v738_v35  ;;  %v74_v35 = vld [vmem:[#allocation2 + $0x68] sm:$0xff] }
  0xff   :  { %v580_v44 = vadd.f32 %v2043_v40, %v67_v37  ;;  %2203 = vmatmul.mubr.msk.f32.gmra.mxu1 %vm28_vm0, %v745_v41  ;;  %v1951_v41 = vunpack.c.h.bf16 %v1996_v24 }
 0x100   :  { %v2045_v46 = vpop.f32.mrf.mxu0  ;;  %v2699_v47 = vld [vmem:[#allocation2 + $0x20] sm:$0xff] }
 0x101   :  { %613 = vst.msk [vmem:[#allocation2 + $0x30] sm:$0xff] %vm28_vm0, %v580_v44  ;;  %v2046_v48 = vadd.f32 %v2045_v46, %v2044_v43  ;;  %v746_v49 = vmul.f32 %v1938_v42, %v2699_v47  ;;  %v1997_v43 = vld [vmem:[%s3359_s2 + $0x30] sm:$0xff]  }
 0x102   :  { %v2047_v51 = vpop.f32.mrf.mxu0 }
 0x103   :  { %v581_v53 = vadd.f32 %v2046_v48, %v68_v45  ;;  %2205 = vmatprep.mubr.msk.f32.mxu1 %vm28_vm0, %v746_v49  ;;  %v75_v45 = vld [vmem:[#allocation2 + $0x70] sm:$0xff] }
 0x104   :  { %v2048_v55 = vpop.f32.mrf.mxu0  ;;  %v2707_v56 = vld [vmem:[#allocation2 + $0x28] sm:$0xff] }
 0x105   :  { %614 = vst.msk [vmem:[#allocation2 + $0x38] sm:$0xff] %vm28_vm0, %v581_v53  ;;  %v2049_v57 = vadd.f32 %v2048_v55, %v2047_v51  ;;  %v747_v58 = vmul.f32 %v1939_v50, %v2707_v56  ;;  %v1954_v51 = vunpack.c.l.bf16 %v1997_v43 }
 0x106   :  { %v2050_v60 = vpop.f32.mrf.mxu0 }
 0x107   :  { %v582_v61 = vadd.f32 %v2049_v57, %v69_v54  ;;  %2206 = vmatmul.mubr.msk.f32.gmra.mxu1 %vm28_vm0, %v747_v58  ;;  %v76_v54 = vld [vmem:[#allocation2 + $0x78] sm:$0xff] }
 0x108   :  { %v2051_v63 = vpop.f32.mrf.mxu0  ;;  %v2712_v0 = vld [vmem:[#allocation2 + $0x30] sm:$0xff] }
 0x109   :  { %615 = vst.msk [vmem:[#allocation2 + $0x40] sm:$0xff] %vm28_vm0, %v582_v61  ;;  %v2052_v1 = vadd.f32 %v2051_v63, %v2050_v60  ;;  %v748_v2 = vmul.f32 %v1942_v59, %v2712_v0  ;;  %v1955_v60 = vunpack.c.h.bf16 %v1997_v43  ;;  %v81_v43 = vld [vmem:[#allocation2 + $0xa0] sm:$0xff] }
 0x10a   :  { %v2053_v4 = vpop.f32.mrf.mxu0 }
 0x10b   :  { %v583_v6 = vadd.f32 %v2052_v1, %v70_v62  ;;  %2208 = vmatprep.mubr.msk.f32.mxu1 %vm28_vm0, %v748_v2  ;;  %v1998_v62 = vld [vmem:[%s3359_s2 + $0x38] sm:$0xff]   ;;  %v77_v1 = vld [vmem:[#allocation2 + $0x80] sm:$0xff] }
 0x10c   :  { %v2054_v8 = vpop.f32.mrf.mxu0  ;;  %v2720_v9 = vld [vmem:[#allocation2 + $0x38] sm:$0xff] }
 0x10d   :  { %616 = vst.msk [vmem:[#allocation2 + $0x48] sm:$0xff] %vm28_vm0, %v583_v6  ;;  %v2055_v11 = vadd.f32 %v2054_v8, %v2053_v4  ;;  %v749_v12 = vmul.f32 %v1943_v3, %v2720_v9  ;;  %v1958_v6 = vunpack.c.l.bf16 %v1998_v62 }
 0x10e   :  { %v2056_v14 = vpop.f32.mrf.mxu0 }
 0x10f   :  { %v584_v15 = vadd.f32 %v2055_v11, %v71_v7  ;;  %2209 = vmatmul.mubr.msk.f32.gmra.mxu1 %vm28_vm0, %v749_v12  ;;  %v78_v11 = vld [vmem:[#allocation2 + $0x88] sm:$0xff] }
 0x110   :  { %v2057_v17 = vpop.f32.mrf.mxu0  ;;  %v2725_v18 = vld [vmem:[#allocation2 + $0x40] sm:$0xff] }
 0x111   :  { %617 = vst.msk [vmem:[#allocation2 + $0x50] sm:$0xff] %vm28_vm0, %v584_v15  ;;  %v2058_v20 = vadd.f32 %v2057_v17, %v2056_v14  ;;  %v750_v21 = vmul.f32 %v1946_v13, %v2725_v18 }
 0x112   :  { %v2059_v23 = vpop.f32.mrf.mxu0 }
 0x113   :  { %v585_v25 = vadd.f32 %v2058_v20, %v72_v16  ;;  %2211 = vmatprep.mubr.msk.f32.mxu1 %vm28_vm0, %v750_v21  ;;  %v1959_v16 = vunpack.c.h.bf16 %v1998_v62  ;;  %v1999_v20 = vld [vmem:[%s3359_s2 + $0x40] sm:$0xff]   ;;  %v2001_v62 = vld [vmem:[%s3359_s2 + $0x50] sm:$0xff]  }
 0x114   :  { %v2060_v27 = vpop.f32.mrf.mxu0  ;;  %v2733_v29 = vld [vmem:[#allocation2 + $0x48] sm:$0xff] }
 0x115   :  { %618 = vst.msk [vmem:[#allocation2 + $0x58] sm:$0xff] %vm28_vm0, %v585_v25  ;;  %v2061_v30 = vadd.f32 %v2060_v27, %v2059_v23  ;;  %v751_v31 = vmul.f32 %v1947_v22, %v2733_v29  ;;  %v79_v22 = vld [vmem:[#allocation2 + $0x90] sm:$0xff]  ;;  %v1962_v27 = vunpack.c.l.bf16 %v1999_v20 }
 0x116   :  { %v2062_v33 = vpop.f32.mrf.mxu0 }
 0x117   :  { %v586_v34 = vadd.f32 %v2061_v30, %v73_v26  ;;  %2212 = vmatmul.mubr.msk.f32.gmra.mxu1 %vm28_vm0, %v751_v31 }
 0x118   :  { %v2063_v36 = vpop.f32.mrf.mxu0  ;;  %v2738_v37 = vld [vmem:[#allocation2 + $0x50] sm:$0xff] }
 0x119   :  { %619 = vst.msk [vmem:[#allocation2 + $0x60] sm:$0xff] %vm28_vm0, %v586_v34  ;;  %v2064_v38 = vadd.f32 %v2063_v36, %v2062_v33  ;;  %v752_v40 = vmul.f32 %v1950_v32, %v2738_v37  ;;  %v80_v32 = vld [vmem:[#allocation2 + $0x98] sm:$0xff] }
 0x11a   :  { %v2065_v42 = vpop.f32.mrf.mxu0 }
 0x11b   :  { %v587_v44 = vadd.f32 %v2064_v38, %v74_v35  ;;  %2214 = vmatprep.mubr.msk.f32.mxu1 %vm28_vm0, %v752_v40  ;;  %v1963_v38 = vunpack.c.h.bf16 %v1999_v20  ;;  %v1971_v20 = vunpack.c.h.bf16 %v2001_v62 }
 0x11c   :  { %v2066_v46 = vpop.f32.mrf.mxu0  ;;  %v2746_v48 = vld [vmem:[#allocation2 + $0x58] sm:$0xff] }
 0x11d   :  { %620 = vst.msk [vmem:[#allocation2 + $0x68] sm:$0xff] %vm28_vm0, %v587_v44  ;;  %v2067_v49 = vadd.f32 %v2066_v46, %v2065_v42  ;;  %v753_v50 = vmul.f32 %v1951_v41, %v2746_v48  ;;  %v2000_v41 = vld [vmem:[%s3359_s2 + $0x48] sm:$0xff]  }
 0x11e   :  { %v2068_v52 = vpop.f32.mrf.mxu0 }
 0x11f   :  { %v588_v53 = vadd.f32 %v2067_v49, %v75_v45  ;;  %2215 = vmatmul.mubr.msk.f32.gmra.mxu1 %vm28_vm0, %v753_v50  ;;  %v1966_v50 = vunpack.c.l.bf16 %v2000_v41 }
 0x120   :  { %v2069_v55 = vpop.f32.mrf.mxu0  ;;  %v2751_v57 = vld [vmem:[#allocation2 + $0x60] sm:$0xff] }
 0x121   :  { %621 = vst.msk [vmem:[#allocation2 + $0x70] sm:$0xff] %vm28_vm0, %v588_v53  ;;  %v2070_v58 = vadd.f32 %v2069_v55, %v2068_v52  ;;  %v754_v59 = vmul.f32 %v1954_v51, %v2751_v57  ;;  %v82_v53 = vld [vmem:[#allocation2 + $0xa8] sm:$0xff] }
 0x122   :  { %v2071_v61 = vpop.f32.mrf.mxu0 }
 0x123   :  { %v589_v63 = vadd.f32 %v2070_v58, %v76_v54  ;;  %2217 = vmatprep.mubr.msk.f32.mxu1 %vm28_vm0, %v754_v59 }
 0x124   :  { %v2072_v2 = vpop.f32.mrf.mxu0  ;;  %v2759_v3 = vld [vmem:[#allocation2 + $0x68] sm:$0xff] }
 0x125   :  { %622 = vst.msk [vmem:[#allocation2 + $0x78] sm:$0xff] %vm28_vm0, %v589_v63  ;;  %v2073_v4 = vadd.f32 %v2072_v2, %v2071_v61  ;;  %v755_v5 = vmul.f32 %v1955_v60, %v2759_v3  ;;  %v1967_v60 = vunpack.c.h.bf16 %v2000_v41 }
 0x126   :  { %v2074_v7 = vpop.f32.mrf.mxu0 }
 0x127   :  { %v590_v8 = vadd.f32 %v2073_v4, %v77_v1  ;;  %2218 = vmatmul.mubr.msk.f32.gmra.mxu1 %vm28_vm0, %v755_v5  ;;  %v83_v1 = vld [vmem:[#allocation2 + $0xb0] sm:$0xff] }
 0x128   :  { %v2075_v12 = vpop.f32.mrf.mxu0  ;;  %v2764_v13 = vld [vmem:[#allocation2 + $0x70] sm:$0xff] }
 0x129   :  { %623 = vst.msk [vmem:[#allocation2 + $0x80] sm:$0xff] %vm28_vm0, %v590_v8  ;;  %v2076_v14 = vadd.f32 %v2075_v12, %v2074_v7  ;;  %v756_v15 = vmul.f32 %v1958_v6, %v2764_v13  ;;  %v1970_v7 = vunpack.c.l.bf16 %v2001_v62  ;;  %v84_v12 = vld [vmem:[#allocation2 + $0xb8] sm:$0xff] }
 0x12a   :  { %v2077_v17 = vpop.f32.mrf.mxu0 }
 0x12b   :  { %v591_v21 = vadd.f32 %v2076_v14, %v78_v11  ;;  %2220 = vmatprep.mubr.msk.f32.mxu1 %vm28_vm0, %v756_v15 }
 0x12c   :  { %v2078_v23 = vpop.f32.mrf.mxu0  ;;  %v2772_v24 = vld [vmem:[#allocation2 + $0x78] sm:$0xff] }
 0x12d   :  { %624 = vst.msk [vmem:[#allocation2 + $0x88] sm:$0xff] %vm28_vm0, %v591_v21  ;;  %v2079_v25 = vadd.f32 %v2078_v23, %v2077_v17  ;;  %v757_v26 = vmul.f32 %v1959_v16, %v2772_v24 }
 0x12e   :  { %v2080_v30 = vpop.f32.mrf.mxu0 }
 0x12f   :  { %v592_v31 = vadd.f32 %v2079_v25, %v79_v22  ;;  %2221 = vmatmul.mubr.msk.f32.gmra.mxu1 %vm28_vm0, %v757_v26  ;;  %v2002_v22 = vld [vmem:[%s3359_s2 + $0x58] sm:$0xff]   ;;  %v85_v25 = vld [vmem:[#allocation2 + $0xc0] sm:$0xff] }
 0x130   :  { %v2081_v33 = vpop.f32.mrf.mxu0  ;;  %v2777_v34 = vld [vmem:[#allocation2 + $0x80] sm:$0xff] }
 0x131   :  { %625 = vst.msk [vmem:[#allocation2 + $0x90] sm:$0xff] %vm28_vm0, %v592_v31  ;;  %v2082_v35 = vadd.f32 %v2081_v33, %v2080_v30  ;;  %v758_v36 = vmul.f32 %v1962_v27, %v2777_v34 }
 0x132   :  { %v2083_v40 = vpop.f32.mrf.mxu0 }
 0x133   :  { %v593_v42 = vadd.f32 %v2082_v35, %v80_v32  ;;  %2223 = vmatprep.mubr.msk.f32.mxu1 %vm28_vm0, %v758_v36  ;;  %v1974_v32 = vunpack.c.l.bf16 %v2002_v22  ;;  %v86_v36 = vld [vmem:[#allocation2 + $0xc8] sm:$0xff] }
 0x134   :  { %v2084_v44 = vpop.f32.mrf.mxu0  ;;  %v2785_v45 = vld [vmem:[#allocation2 + $0x88] sm:$0xff] }
 0x135   :  { %626 = vst.msk [vmem:[#allocation2 + $0x98] sm:$0xff] %vm28_vm0, %v593_v42  ;;  %v2085_v46 = vadd.f32 %v2084_v44, %v2083_v40  ;;  %v759_v49 = vmul.f32 %v1963_v38, %v2785_v45 }
 0x136   :  { %v2086_v51 = vpop.f32.mrf.mxu0 }
 0x137   :  { %v594_v52 = vadd.f32 %v2085_v46, %v81_v43  ;;  %2224 = vmatmul.mubr.msk.f32.gmra.mxu1 %vm28_vm0, %v759_v49  ;;  %v1975_v43 = vunpack.c.h.bf16 %v2002_v22  ;;  %v2003_v46 = vld [vmem:[%s3359_s2 + $0x60] sm:$0xff]  }
 0x138   :  { %v2087_v54 = vpop.f32.mrf.mxu0  ;;  %v2790_v55 = vld [vmem:[#allocation2 + $0x90] sm:$0xff] }
 0x139   :  { %627 = vst.msk [vmem:[#allocation2 + $0xa0] sm:$0xff] %vm28_vm0, %v594_v52  ;;  %v2088_v58 = vadd.f32 %v2087_v54, %v2086_v51  ;;  %v760_v59 = vmul.f32 %v1966_v50, %v2790_v55  ;;  %v87_v50 = vld [vmem:[#allocation2 + $0xd0] sm:$0xff] }
 0x13a   :  { %v2089_v61 = vpop.f32.mrf.mxu0 }
 0x13b   :  { %v595_v63 = vadd.f32 %v2088_v58, %v82_v53  ;;  %2226 = vmatprep.mubr.msk.f32.mxu1 %vm28_vm0, %v760_v59  ;;  %v1978_v58 = vunpack.c.l.bf16 %v2003_v46 }
 0x13c   :  { %v2090_v2 = vpop.f32.mrf.mxu0  ;;  %v2798_v4 = vld [vmem:[#allocation2 + $0x98] sm:$0xff] }
 0x13d   :  { %628 = vst.msk [vmem:[#allocation2 + $0xa8] sm:$0xff] %vm28_vm0, %v595_v63  ;;  %v2091_v5 = vadd.f32 %v2090_v2, %v2089_v61  ;;  %v761_v6 = vmul.f32 %v1967_v60, %v2798_v4  ;;  %v88_v61 = vld [vmem:[#allocation2 + $0xd8] sm:$0xff] }
 0x13e   :  { %v2092_v8 = vpop.f32.mrf.mxu0 }
 0x13f   :  { %v596_v11 = vadd.f32 %v2091_v5, %v83_v1  ;;  %2227 = vmatmul.mubr.msk.f32.gmra.mxu1 %vm28_vm0, %v761_v6  ;;  %v1979_v5 = vunpack.c.h.bf16 %v2003_v46 }
 0x140   :  { %v2093_v14 = vpop.f32.mrf.mxu0  ;;  %v2803_v15 = vld [vmem:[#allocation2 + $0xa0] sm:$0xff] }
 0x141   :  { %629 = vst.msk [vmem:[#allocation2 + $0xb0] sm:$0xff] %vm28_vm0, %v596_v11  ;;  %v2094_v16 = vadd.f32 %v2093_v14, %v2092_v8  ;;  %v762_v17 = vmul.f32 %v1970_v7, %v2803_v15  ;;  %v2004_v7 = vld [vmem:[%s3359_s2 + $0x68] sm:$0xff]   ;;  %v89_v11 = vld [vmem:[#allocation2 + $0xe0] sm:$0xff] }
 0x142   :  { %v2095_v21 = vpop.f32.mrf.mxu0 }
 0x143   :  { %v597_v23 = vadd.f32 %v2094_v16, %v84_v12  ;;  %2229 = vmatprep.mubr.msk.f32.mxu1 %vm28_vm0, %v762_v17 }
 0x144   :  { %v2096_v26 = vpop.f32.mrf.mxu0  ;;  %v2811_v27 = vld [vmem:[#allocation2 + $0xa8] sm:$0xff] }
 0x145   :  { %630 = vst.msk [vmem:[#allocation2 + $0xb8] sm:$0xff] %vm28_vm0, %v597_v23  ;;  %v2097_v30 = vadd.f32 %v2096_v26, %v2095_v21  ;;  %v763_v31 = vmul.f32 %v1971_v20, %v2811_v27  ;;  %v1982_v20 = vunpack.c.l.bf16 %v2004_v7  ;;  %v90_v23 = vld [vmem:[#allocation2 + $0xe8] sm:$0xff] }
 0x146   :  { %v2098_v33 = vpop.f32.mrf.mxu0 }
 0x147   :  { %v598_v35 = vadd.f32 %v2097_v30, %v85_v25  ;;  %2230 = vmatmul.mubr.msk.f32.gmra.mxu1 %vm28_vm0, %v763_v31 }
 0x148   :  { %v2099_v38 = vpop.f32.mrf.mxu0  ;;  %v2816_v40 = vld [vmem:[#allocation2 + $0xb0] sm:$0xff] }
 0x149   :  { %631 = vst.msk [vmem:[#allocation2 + $0xc0] sm:$0xff] %vm28_vm0, %v598_v35  ;;  %v2100_v41 = vadd.f32 %v2099_v38, %v2098_v33  ;;  %v764_v42 = vmul.f32 %v1974_v32, %v2816_v40  ;;  %v1983_v32 = vunpack.c.h.bf16 %v2004_v7  ;;  %v2005_v35 = vld [vmem:[%s3359_s2 + $0x70] sm:$0xff]  }
 0x14a   :  { %v2101_v44 = vpop.f32.mrf.mxu0  ;;  %v91_v38 = vld [vmem:[#allocation2 + $0xf0] sm:$0xff]  ;;  %v1986_v46 = vunpack.c.l.bf16 %v2005_v35 }
 0x14b   :  { %v599_v49 = vadd.f32 %v2100_v41, %v86_v36  ;;  %2232 = vmatprep.mubr.msk.f32.mxu1 %vm28_vm0, %v764_v42 }
 0x14c   :  { %v2102_v51 = vpop.f32.mrf.mxu0  ;;  %v2824_v52 = vld [vmem:[#allocation2 + $0xb8] sm:$0xff] }
 0x14d   :  { %632 = vst.msk [vmem:[#allocation2 + $0xc8] sm:$0xff] %vm28_vm0, %v599_v49  ;;  %v2103_v53 = vadd.f32 %v2102_v51, %v2101_v44  ;;  %v765_v54 = vmul.f32 %v1975_v43, %v2824_v52  ;;  %v92_v51 = vld [vmem:[#allocation2 + $0xf8] sm:$0xff] }
 0x14e   :  { %v2104_v59 = vpop.f32.mrf.mxu0 }
 0x14f   :  { %v600_v60 = vadd.f32 %v2103_v53, %v87_v50  ;;  %2233 = vmatmul.mubr.msk.f32.gmra.mxu1 %vm28_vm0, %v765_v54 }
 0x150   :  { %v2105_v62 = vpop.f32.mrf.mxu0  ;;  %v2829_v63 = vld [vmem:[#allocation2 + $0xc0] sm:$0xff] }
 0x151   :  { %633 = vst.msk [vmem:[#allocation2 + $0xd0] sm:$0xff] %vm28_vm0, %v600_v60  ;;  %v2106_v1 = vadd.f32 %v2105_v62, %v2104_v59  ;;  %v766_v2 = vmul.f32 %v1978_v58, %v2829_v63  ;;  %v1987_v60 = vunpack.c.h.bf16 %v2005_v35 }
 0x152   :  { %v2107_v6 = vpop.f32.mrf.mxu0 }
 0x153   :  { %v601_v8 = vadd.f32 %v2106_v1, %v88_v61  ;;  %2235 = vmatprep.mubr.msk.f32.mxu1 %vm28_vm0, %v766_v2  ;;  %v2006_v61 = vld [vmem:[%s3359_s2 + $0x78] sm:$0xff]  }
 0x154   :  { %v2108_v12 = vpop.f32.mrf.mxu0  ;;  %v2837_v14 = vld [vmem:[#allocation2 + $0xc8] sm:$0xff] }
 0x155   :  { %634 = vst.msk [vmem:[#allocation2 + $0xd8] sm:$0xff] %vm28_vm0, %v601_v8  ;;  %v2109_v16 = vadd.f32 %v2108_v12, %v2107_v6  ;;  %v767_v17 = vmul.f32 %v1979_v5, %v2837_v14  ;;  %v1990_v5 = vunpack.c.l.bf16 %v2006_v61  ;;  %v1991_v8 = vunpack.c.h.bf16 %v2006_v61 }
 0x156   :  { %v2110_v21 = vpop.f32.mrf.mxu0 }
 0x157   :  { %v602_v22 = vadd.f32 %v2109_v16, %v89_v11  ;;  %2236 = vmatmul.mubr.msk.f32.gmra.mxu1 %vm28_vm0, %v767_v17 }
 0x158   :  { %v2111_v25 = vpop.f32.mrf.mxu0  ;;  %v2842_v26 = vld [vmem:[#allocation2 + $0xd0] sm:$0xff] }
 0x159   :  { %635 = vst.msk [vmem:[#allocation2 + $0xe0] sm:$0xff] %vm28_vm0, %v602_v22  ;;  %v2112_v30 = vadd.f32 %v2111_v25, %v2110_v21  ;;  %v768_v31 = vmul.f32 %v1982_v20, %v2842_v26 }
 0x15a   :  { %v2113_v33 = vpop.f32.mrf.mxu0 }
 0x15b   :  { %v603_v36 = vadd.f32 %v2112_v30, %v90_v23  ;;  %2238 = vmatprep.mubr.msk.f32.mxu1 %vm28_vm0, %v768_v31 }
 0x15c   :  { %v2114_v41 = vpop.f32.mrf.mxu0  ;;  %v669_v42 = vld [vmem:[#allocation2 + $0xd8] sm:$0xff] }
 0x15d   :  { %636 = vst.msk [vmem:[#allocation2 + $0xe8] sm:$0xff] %vm28_vm0, %v603_v36  ;;  %v2115_v43 = vadd.f32 %v2114_v41, %v2113_v33  ;;  %v769_v44 = vmul.f32 %v1983_v32, %v669_v42 }
 0x15e   :  { %v2116_v49 = vpop.f32.mrf.mxu0 }
 0x15f   :  { %v604_v50 = vadd.f32 %v2115_v43, %v91_v38  ;;  %2239 = vmatmul.mubr.msk.f32.gmra.mxu1 %vm28_vm0, %v769_v44 }
 0x160   :  { %v2117_v53 = vpop.f32.mrf.mxu0  ;;  %v670_v54 = vld [vmem:[#allocation2 + $0xe0] sm:$0xff] }
 0x161   :  { %637 = vst.msk [vmem:[#allocation2 + $0xf0] sm:$0xff] %vm28_vm0, %v604_v50  ;;  %v2118_v58 = vadd.f32 %v2117_v53, %v2116_v49  ;;  %v770_v59 = vmul.f32 %v1986_v46, %v670_v54 }
 0x163   :  { %v605_v62 = vadd.f32 %v2118_v58, %v92_v51  ;;  %2241 = vmatprep.mubr.msk.f32.mxu1 %vm28_vm0, %v770_v59 }
 0x164   :  { %v671_v1 = vld [vmem:[#allocation2 + $0xe8] sm:$0xff] }
 0x165   :  { %638 = vst.msk [vmem:[#allocation2 + $0xf8] sm:$0xff] %vm28_vm0, %v605_v62  ;;  %v771_v2 = vmul.f32 %v1987_v60, %v671_v1 }
 0x167   :  { %2242 = vmatmul.mubr.msk.f32.gmra.mxu1 %vm28_vm0, %v771_v2 }
 0x168   :  { %v672_v6 = vld [vmem:[#allocation2 + $0xf0] sm:$0xff] }
 0x169   :  { %v772_v7 = vmul.f32 %v1990_v5, %v672_v6 }
 0x16b   :  { %2244 = vmatprep.mubr.msk.f32.mxu1 %vm28_vm0, %v772_v7 }
 0x16c   :  { %v673_v11 = vld [vmem:[#allocation2 + $0xf8] sm:$0xff] }
 0x16d   :  { %v773_v12 = vmul.f32 %v1991_v8, %v673_v11 }
 0x16f   :  { %2245 = vmatmul.mubr.msk.f32.gmra.mxu1 %vm28_vm0, %v773_v12 }
 0x170   :  { %2255 = vmatprep.mubr.msk.f32.mxu1 %vm28_vm0, %v2664_v10 }
 0x173   :  { %2256 = vmatmul.mubr.msk.f32.vlgmr.msra.gmra.mxu1 %vm28_vm0, %v2672_v19 }
 0x174   :  { %2258 = vmatprep.mubr.msk.f32.mxu1 %vm28_vm0, %v2680_v28 }
 0x177   :  { %2259 = vmatmul.mubr.msk.f32.gmra.mxu1 %vm28_vm0, %v2694_v39 }
 0x178   :  { %2261 = vmatprep.mubr.msk.f32.mxu1 %vm28_vm0, %v2699_v47 }
 0x17b   :  { %2262 = vmatmul.mubr.msk.f32.gmra.mxu1 %vm28_vm0, %v2707_v56 }
 0x17c   :  { %2264 = vmatprep.mubr.msk.f32.mxu1 %vm28_vm0, %v2712_v0 }
 0x17f   :  { %2265 = vmatmul.mubr.msk.f32.gmra.mxu1 %vm28_vm0, %v2720_v9 }
 0x180   :  { %2267 = vmatprep.mubr.msk.f32.mxu1 %vm28_vm0, %v2725_v18 }
 0x183   :  { %2268 = vmatmul.mubr.msk.f32.gmra.mxu1 %vm28_vm0, %v2733_v29 }
 0x184   :  { %2270 = vmatprep.mubr.msk.f32.mxu1 %vm28_vm0, %v2738_v37 }
 0x187   :  { %2271 = vmatmul.mubr.msk.f32.gmra.mxu1 %vm28_vm0, %v2746_v48 }
 0x188   :  { %2273 = vmatprep.mubr.msk.f32.mxu1 %vm28_vm0, %v2751_v57 }
 0x18b   :  { %2274 = vmatmul.mubr.msk.f32.gmra.mxu1 %vm28_vm0, %v2759_v3 }
 0x18c   :  { %2276 = vmatprep.mubr.msk.f32.mxu1 %vm28_vm0, %v2764_v13 }
 0x18f   :  { %2277 = vmatmul.mubr.msk.f32.gmra.mxu1 %vm28_vm0, %v2772_v24 }
 0x190   :  { %2279 = vmatprep.mubr.msk.f32.mxu1 %vm28_vm0, %v2777_v34 }
 0x193   :  { %2280 = vmatmul.mubr.msk.f32.gmra.mxu1 %vm28_vm0, %v2785_v45 }
 0x194   :  { %2282 = vmatprep.mubr.msk.f32.mxu1 %vm28_vm0, %v2790_v55 }
 0x197   :  { %2283 = vmatmul.mubr.msk.f32.gmra.mxu1 %vm28_vm0, %v2798_v4 }
 0x198   :  { %2285 = vmatprep.mubr.msk.f32.mxu1 %vm28_vm0, %v2803_v15 }
 0x19b   :  { %2286 = vmatmul.mubr.msk.f32.gmra.mxu1 %vm28_vm0, %v2811_v27 }
 0x19c   :  { %2288 = vmatprep.mubr.msk.f32.mxu1 %vm28_vm0, %v2816_v40 }
 0x19f   :  { %2289 = vmatmul.mubr.msk.f32.gmra.mxu1 %vm28_vm0, %v2824_v52 }
 0x1a0   :  { %2291 = vmatprep.mubr.msk.f32.mxu1 %vm28_vm0, %v2829_v63 }
 0x1a3   :  { %2292 = vmatmul.mubr.msk.f32.gmra.mxu1 %vm28_vm0, %v2837_v14 }
 0x1a4   :  { %2294 = vmatprep.mubr.msk.f32.mxu1 %vm28_vm0, %v2842_v26  ;;  %v2975_v26 = vld [vmem:[%s3360_s5] ss:$0 sm:$0xff] }
 0x1a7   :  { %2295 = vmatmul.mubr.msk.f32.gmra.mxu1 %vm28_vm0, %v669_v42 }
 0x1a8   :  { %2297 = vmatprep.mubr.msk.f32.mxu1 %vm28_vm0, %v670_v54 }
 0x1ab   :  { %2298 = vmatmul.mubr.msk.f32.gmra.mxu1 %vm28_vm0, %v671_v1 }
 0x1ac   :  { %2300 = vmatprep.mubr.msk.f32.mxu1 %vm28_vm0, %v672_v6 }
 0x1af   :  { %2301 = vmatmul.mubr.msk.f32.gmra.mxu1 %vm28_vm0, %v673_v11 }
 0x1b7   :  { %v2201_v10 = vpop.f32.mrf.mxu1 }
 0x1b9   :  { %v940_v19 = vpop.f32.mrf.mxu1 }
 0x1bf   :  { %v2204_v28 = vpop.f32.mrf.mxu1 }
 0x1c1   :  { %v950_v39 = vpop.f32.mrf.mxu1 }
 0x1c7   :  { %v2207_v47 = vpop.f32.mrf.mxu1 }
 0x1c9   :  { %v960_v56 = vpop.f32.mrf.mxu1 }
 0x1cf   :  { %v2920_v0 = vpop.f32.mrf.mxu1 }
 0x1d1   :  { %v2922_v9 = vpop.f32.mrf.mxu1 }
 0x1d7   :  { %v2924_v18 = vpop.f32.mrf.mxu1 }
 0x1d9   :  { %v2926_v29 = vpop.f32.mrf.mxu1 }
 0x1df   :  { %v2928_v37 = vpop.f32.mrf.mxu1 }
 0x1e1   :  { %v2930_v48 = vpop.f32.mrf.mxu1 }
 0x1e7   :  { %v2932_v57 = vpop.f32.mrf.mxu1 }
 0x1e9   :  { %v2934_v3 = vpop.f32.mrf.mxu1 }
 0x1ef   :  { %v2936_v13 = vpop.f32.mrf.mxu1 }
 0x1f1   :  { %v2938_v24 = vpop.f32.mrf.mxu1 }
 0x1f7   :  { %v2940_v34 = vpop.f32.mrf.mxu1 }
 0x1f9   :  { %v2942_v45 = vpop.f32.mrf.mxu1 }
 0x1ff   :  { %v2944_v55 = vpop.f32.mrf.mxu1 }
 0x201   :  { %v2946_v4 = vpop.f32.mrf.mxu1 }
 0x207   :  { %v2948_v15 = vpop.f32.mrf.mxu1 }
 0x209   :  { %v2950_v27 = vpop.f32.mrf.mxu1 }
 0x20f   :  { %v2952_v40 = vpop.f32.mrf.mxu1 }
 0x211   :  { %v2954_v52 = vpop.f32.mrf.mxu1 }
 0x217   :  { %v2956_v63 = vpop.f32.mrf.mxu1 }
 0x219   :  { %v2958_v14 = vpop.f32.mrf.mxu1 }
 0x21f   :  { %v2960_v16 = vpop.f32.mrf.mxu1 }
 0x221   :  { %v2962_v17 = vpop.f32.mrf.mxu1 }
 0x227   :  { %v2964_v20 = vpop.f32.mrf.mxu1 }
 0x229   :  { %v2966_v21 = vpop.f32.mrf.mxu1 }
 0x22f   :  { %v2968_v22 = vpop.f32.mrf.mxu1 }
 0x231   :  { %v2970_v23 = vpop.f32.mrf.mxu1 }
 0x233   :  { %v2257_v25 = vpop.f32.mrf.mxu1 }
 0x234   :  { %v1267_v30 = vadd.f32 %v2257_v25, %v2201_v10 }
 0x235   :  { %v1261_v31 = vpop.f32.mrf.mxu1 }
 0x236   :  { %v1428_v32 = vadd.f32 %v2975_v26, %v1267_v30  ;;  %v1262_v33 = vadd.f32 %v1261_v31, %v940_v19 }
 0x237   :  { %v2260_v35 = vpop.f32.mrf.mxu1 }
 0x238   :  { %v1492_v36 = vmul.f32 0.2, %v1428_v32  ;;  %v1427_v38 = vadd.f32 %v2975_v26, %v1262_v33  ;;  %v1277_v41 = vadd.f32 %v2260_v35, %v2204_v28  ;;  %vm1460_vm1 = vcmp.ge.f32.partialorder %v1428_v32, 0.0 }
 0x239   :  { %v1271_v42 = vpop.f32.mrf.mxu1 }
 0x23a   :  { %v1491_v43 = vmul.f32 0.2, %v1427_v38  ;;  %v1430_v44 = vadd.f32 %v2975_v26, %v1277_v41  ;;  %v1272_v46 = vadd.f32 %v1271_v42, %v950_v39  ;;  %v2980_v49 = vsel %vm1460_vm1, %v1428_v32, %v1492_v36 }
 0x23b   :  { %v2263_v50 = vpop.f32.mrf.mxu1  ;;  %v1556_v51 = vmul.f32 %v2980_v49, %v2980_v49  ;;  %vm1459_vm2 = vcmp.ge.f32.partialorder %v1427_v38, 0.0 }
 0x23c   :  { %v1494_v53 = vmul.f32 0.2, %v1430_v44  ;;  %v1429_v54 = vadd.f32 %v2975_v26, %v1272_v46  ;;  %v1287_v58 = vadd.f32 %v2263_v50, %v2207_v47  ;;  %vm1462_vm3 = vcmp.ge.f32.partialorder %v1430_v44, 0.0 }
 0x23d   :  { %v1281_v59 = vpop.f32.mrf.mxu1  ;;  %v1590_v60 = vsel %vm28_vm0, %v1556_v51, 0.0  ;;  %v2986_v61 = vsel %vm1459_vm2, %v1427_v38, %v1491_v43 }
 0x23e   :  { %v1493_v62 = vmul.f32 0.2, %v1429_v54  ;;  %v1432_v1 = vadd.f32 %v2975_v26, %v1287_v58  ;;  %v1282_v2 = vadd.f32 %v1281_v59, %v960_v56  ;;  %1591 = vadd.xlane.f32.xlu0 %v1590_v60  ;;  %v2989_v5 = vsel %vm1462_vm3, %v1430_v44, %v1494_v53 }
 0x23f   :  { %v2266_v6 = vpop.f32.mrf.mxu1  ;;  %v1558_v7 = vmul.f32 %v2989_v5, %v2989_v5  ;;  %v1555_v8 = vmul.f32 %v2986_v61, %v2986_v61  ;;  %vm1461_vm4 = vcmp.ge.f32.partialorder %v1429_v54, 0.0 }
 0x240   :  { %v1496_v11 = vmul.f32 0.2, %v1432_v1  ;;  %v1431_v12 = vadd.f32 %v2975_v26, %v1282_v2  ;;  %v1297_v10 = vadd.f32 %v2266_v6, %v2920_v0  ;;  %v2997_v19 = vsel %vm1461_vm4, %v1429_v54, %v1493_v62 }
 0x241   :  { %v1291_v28 = vpop.f32.mrf.mxu1  ;;  %v1596_v39 = vsel %vm28_vm0, %v1558_v7, 0.0  ;;  %v1587_v47 = vsel %vm28_vm0, %v1555_v8, 0.0  ;;  %v1557_v56 = vmul.f32 %v2997_v19, %v2997_v19  ;;  %vm1464_vm5 = vcmp.ge.f32.partialorder %v1432_v1, 0.0 }
 0x242   :  { %v1495_v25 = vmul.f32 0.2, %v1431_v12  ;;  %v1434_v30 = vadd.f32 %v2975_v26, %v1297_v10  ;;  %v1292_v31 = vadd.f32 %v1291_v28, %v2922_v9  ;;  %1597 = vadd.xlane.f32.xlu1 %v1596_v39  ;;  %1588 = vadd.xlane.f32.xlu0 %v1587_v47  ;;  %vm1463_vm6 = vcmp.ge.f32.partialorder %v1431_v12, 0.0 }
 0x243   :  { %v2269_v0 = vpop.f32.mrf.mxu1  ;;  %v3005_v32 = vsel %vm1464_vm5, %v1432_v1, %v1496_v11  ;;  %v1593_v42 = vsel %vm28_vm0, %v1557_v56, 0.0 }
 0x244   :  { %v1498_v33 = vmul.f32 0.2, %v1434_v30  ;;  %v1433_v35 = vadd.f32 %v2975_v26, %v1292_v31  ;;  %v1307_v36 = vadd.f32 %v2269_v0, %v2924_v18  ;;  %v3009_v38 = vsel %vm1463_vm6, %v1431_v12, %v1495_v25 }
 0x245   :  { %v1301_v41 = vpop.f32.mrf.mxu1  ;;  %v1559_v43 = vmul.f32 %v3009_v38, %v3009_v38  ;;  %v1560_v9 = vmul.f32 %v3005_v32, %v3005_v32  ;;  %vm1466_vm7 = vcmp.ge.f32.partialorder %v1434_v30, 0.0 }
 0x246   :  { %v1497_v44 = vmul.f32 0.2, %v1433_v35  ;;  %v1436_v46 = vadd.f32 %v2975_v26, %v1307_v36  ;;  %v1302_v50 = vadd.f32 %v1301_v41, %v2926_v29  ;;  %1594 = vadd.xlane.f32.xlu1 %v1593_v42  ;;  %vm1465_vm8 = vcmp.ge.f32.partialorder %v1433_v35, 0.0 }
 0x247   :  { %v2272_v18 = vpop.f32.mrf.mxu1  ;;  %v1599_v51 = vsel %vm28_vm0, %v1559_v43, 0.0  ;;  %v3019_v53 = vsel %vm1466_vm7, %v1434_v30, %v1498_v33  ;;  %v1602_v1 = vsel %vm28_vm0, %v1560_v9, 0.0 }
 0x248   :  { %v1500_v54 = vmul.f32 0.2, %v1436_v46  ;;  %v1435_v58 = vadd.f32 %v2975_v26, %v1302_v50  ;;  %v1317_v59 = vadd.f32 %v2272_v18, %v2928_v37  ;;  %1600 = vadd.xlane.f32.xlu0 %v1599_v51  ;;  %v3023_v60 = vsel %vm1465_vm8, %v1433_v35, %v1497_v44 }
 0x249   :  { %v1311_v62 = vpop.f32.mrf.mxu1  ;;  %v1561_v29 = vmul.f32 %v3023_v60, %v3023_v60  ;;  %v1562_v2 = vmul.f32 %v3019_v53, %v3019_v53  ;;  %vm1468_vm9 = vcmp.ge.f32.partialorder %v1436_v46, 0.0 }
 0x24a   :  { %v1499_v6 = vmul.f32 0.2, %v1435_v58  ;;  %v1438_v7 = vadd.f32 %v2975_v26, %v1317_v59  ;;  %v1312_v8 = vadd.f32 %v1311_v62, %v2930_v48  ;;  %1603 = vadd.xlane.f32.xlu1 %v1602_v1  ;;  %vm1467_vm10 = vcmp.ge.f32.partialorder %v1435_v58, 0.0 }
 0x24b   :  { %v2275_v37 = vpop.f32.mrf.mxu1  ;;  %v1605_v11 = vsel %vm28_vm0, %v1561_v29, 0.0  ;;  %v3033_v12 = vsel %vm1468_vm9, %v1436_v46, %v1500_v54  ;;  %v1608_v25 = vsel %vm28_vm0, %v1562_v2, 0.0 }
 0x24c   :  { %v1502_v10 = vmul.f32 0.2, %v1438_v7  ;;  %v1437_v28 = vadd.f32 %v2975_v26, %v1312_v8  ;;  %v1327_v39 = vadd.f32 %v2275_v37, %v2932_v57  ;;  %1606 = vadd.xlane.f32.xlu0 %v1605_v11  ;;  %v3037_v47 = vsel %vm1467_vm10, %v1435_v58, %v1499_v6 }
 0x24d   :  { %v1321_v56 = vpop.f32.mrf.mxu1  ;;  %v1563_v48 = vmul.f32 %v3037_v47, %v3037_v47  ;;  %v1564_v30 = vmul.f32 %v3033_v12, %v3033_v12  ;;  %vm1470_vm11 = vcmp.ge.f32.partialorder %v1438_v7, 0.0 }
 0x24e   :  { %v1501_v31 = vmul.f32 0.2, %v1437_v28  ;;  %v1440_v0 = vadd.f32 %v2975_v26, %v1327_v39  ;;  %v1322_v33 = vadd.f32 %v1321_v56, %v2934_v3  ;;  %1609 = vadd.xlane.f32.xlu1 %v1608_v25  ;;  %vm1469_vm12 = vcmp.ge.f32.partialorder %v1437_v28, 0.0 }
 0x24f   :  { %v2278_v57 = vpop.f32.mrf.mxu1  ;;  %v1611_v35 = vsel %vm28_vm0, %v1563_v48, 0.0  ;;  %v3047_v36 = vsel %vm1470_vm11, %v1438_v7, %v1502_v10  ;;  %v1614_v46 = vsel %vm28_vm0, %v1564_v30, 0.0 }
 0x250   :  { %v1504_v41 = vmul.f32 0.2, %v1440_v0  ;;  %v1439_v42 = vadd.f32 %v2975_v26, %v1322_v33  ;;  %v1337_v43 = vadd.f32 %v2278_v57, %v2936_v13  ;;  %1612 = vadd.xlane.f32.xlu0 %v1611_v35  ;;  %v3051_v9 = vsel %vm1469_vm12, %v1437_v28, %v1501_v31 }
 0x251   :  { %v1331_v44 = vpop.f32.mrf.mxu1  ;;  %v1565_v3 = vmul.f32 %v3051_v9, %v3051_v9  ;;  %v1566_v50 = vmul.f32 %v3047_v36, %v3047_v36  ;;  %vm1472_vm13 = vcmp.ge.f32.partialorder %v1440_v0, 0.0 }
 0x252   :  { %v1503_v18 = vmul.f32 0.2, %v1439_v42  ;;  %v1442_v51 = vadd.f32 %v2975_v26, %v1337_v43  ;;  %v1332_v54 = vadd.f32 %v1331_v44, %v2938_v24  ;;  %1615 = vadd.xlane.f32.xlu1 %v1614_v46  ;;  %vm1471_vm14 = vcmp.ge.f32.partialorder %v1439_v42, 0.0 }
 0x253   :  { %v2281_v13 = vpop.f32.mrf.mxu1  ;;  %v1617_v58 = vsel %vm28_vm0, %v1565_v3, 0.0  ;;  %v3061_v59 = vsel %vm1472_vm13, %v1440_v0, %v1504_v41  ;;  %v1620_v7 = vsel %vm28_vm0, %v1566_v50, 0.0 }
 0x254   :  { %v1506_v62 = vmul.f32 0.2, %v1442_v51  ;;  %v1441_v1 = vadd.f32 %v2975_v26, %v1332_v54  ;;  %v1347_v29 = vadd.f32 %v2281_v13, %v2940_v34  ;;  %1618 = vadd.xlane.f32.xlu0 %v1617_v58  ;;  %v3065_v2 = vsel %vm1471_vm14, %v1439_v42, %v1503_v18 }
 0x255   :  { %v1341_v6 = vpop.f32.mrf.mxu1  ;;  %v1567_v24 = vmul.f32 %v3065_v2, %v3065_v2  ;;  %v1568_v8 = vmul.f32 %v3061_v59, %v3061_v59  ;;  %vm1474_vm15 = vcmp.ge.f32.partialorder %v1442_v51, 0.0 }
 0x256   :  { %v1505_v37 = vmul.f32 0.2, %v1441_v1  ;;  %v1444_v11 = vadd.f32 %v2975_v26, %v1347_v29  ;;  %v1342_v10 = vadd.f32 %v1341_v6, %v2942_v45  ;;  %1621 = vadd.xlane.f32.xlu1 %v1620_v7  ;;  %vm1473_vm1 = vcmp.ge.f32.partialorder %v1441_v1, 0.0 }
 0x257   :  { %v2284_v34 = vpop.f32.mrf.mxu1  ;;  %v1623_v28 = vsel %vm28_vm0, %v1567_v24, 0.0  ;;  %v3075_v39 = vsel %vm1474_vm15, %v1442_v51, %v1506_v62  ;;  %v1626_v0 = vsel %vm28_vm0, %v1568_v8, 0.0 }
 0x258   :  { %v1508_v56 = vmul.f32 0.2, %v1444_v11  ;;  %v1443_v25 = vadd.f32 %v2975_v26, %v1342_v10  ;;  %v1357_v48 = vadd.f32 %v2284_v34, %v2944_v55  ;;  %1624 = vadd.xlane.f32.xlu0 %v1623_v28  ;;  %v3079_v30 = vsel %vm1473_vm1, %v1441_v1, %v1505_v37 }
 0x259   :  { %v1351_v31 = vpop.f32.mrf.mxu1  ;;  %v1569_v45 = vmul.f32 %v3079_v30, %v3079_v30  ;;  %v1570_v33 = vmul.f32 %v3075_v39, %v3075_v39  ;;  %vm1476_vm2 = vcmp.ge.f32.partialorder %v1444_v11, 0.0 }
 0x25a   :  { %v1507_v57 = vmul.f32 0.2, %v1443_v25  ;;  %v1446_v35 = vadd.f32 %v2975_v26, %v1357_v48  ;;  %v1352_v41 = vadd.f32 %v1351_v31, %v2946_v4  ;;  %1627 = vadd.xlane.f32.xlu1 %v1626_v0  ;;  %vm1475_vm3 = vcmp.ge.f32.partialorder %v1443_v25, 0.0 }
 0x25b   :  { %v2287_v55 = vpop.f32.mrf.mxu1  ;;  %v1629_v42 = vsel %vm28_vm0, %v1569_v45, 0.0  ;;  %v3089_v43 = vsel %vm1476_vm2, %v1444_v11, %v1508_v56  ;;  %v1632_v51 = vsel %vm28_vm0, %v1570_v33, 0.0 }
 0x25c   :  { %v1510_v44 = vmul.f32 0.2, %v1446_v35  ;;  %v1445_v46 = vadd.f32 %v2975_v26, %v1352_v41  ;;  %v1367_v3 = vadd.f32 %v2287_v55, %v2948_v15  ;;  %1630 = vadd.xlane.f32.xlu0 %v1629_v42  ;;  %v3093_v50 = vsel %vm1475_vm3, %v1443_v25, %v1507_v57 }
 0x25d   :  { %v1361_v18 = vpop.f32.mrf.mxu1  ;;  %v1571_v4 = vmul.f32 %v3093_v50, %v3093_v50  ;;  %v1572_v54 = vmul.f32 %v3089_v43, %v3089_v43  ;;  %vm1478_vm4 = vcmp.ge.f32.partialorder %v1446_v35, 0.0 }
 0x25e   :  { %v1509_v13 = vmul.f32 0.2, %v1445_v46  ;;  %v1448_v58 = vadd.f32 %v2975_v26, %v1367_v3  ;;  %v1362_v62 = vadd.f32 %v1361_v18, %v2950_v27  ;;  %1633 = vadd.xlane.f32.xlu1 %v1632_v51  ;;  %vm1477_vm5 = vcmp.ge.f32.partialorder %v1445_v46, 0.0 }
 0x25f   :  { %v2290_v15 = vpop.f32.mrf.mxu1  ;;  %v1635_v1 = vsel %vm28_vm0, %v1571_v4, 0.0  ;;  %v3103_v29 = vsel %vm1478_vm4, %v1446_v35, %v1510_v44  ;;  %v1638_v11 = vsel %vm28_vm0, %v1572_v54, 0.0 }
 0x260   :  { %v1512_v6 = vmul.f32 0.2, %v1448_v58  ;;  %v1447_v7 = vadd.f32 %v2975_v26, %v1362_v62  ;;  %v1377_v24 = vadd.f32 %v2290_v15, %v2952_v40  ;;  %1636 = vadd.xlane.f32.xlu0 %v1635_v1  ;;  %v3107_v8 = vsel %vm1477_vm5, %v1445_v46, %v1509_v13 }
 0x261   :  { %v1371_v37 = vpop.f32.mrf.mxu1  ;;  %v1573_v27 = vmul.f32 %v3107_v8, %v3107_v8  ;;  %v1574_v10 = vmul.f32 %v3103_v29, %v3103_v29  ;;  %vm1480_vm6 = vcmp.ge.f32.partialorder %v1448_v58, 0.0 }
 0x262   :  { %v1511_v34 = vmul.f32 0.2, %v1447_v7  ;;  %v1450_v28 = vadd.f32 %v2975_v26, %v1377_v24  ;;  %v1372_v56 = vadd.f32 %v1371_v37, %v2954_v52  ;;  %1639 = vadd.xlane.f32.xlu1 %v1638_v11  ;;  %vm1479_vm7 = vcmp.ge.f32.partialorder %v1447_v7, 0.0 }
 0x263   :  { %v2293_v40 = vpop.f32.mrf.mxu1  ;;  %v1641_v25 = vsel %vm28_vm0, %v1573_v27, 0.0  ;;  %v3117_v48 = vsel %vm1480_vm6, %v1448_v58, %v1512_v6  ;;  %v1644_v35 = vsel %vm28_vm0, %v1574_v10, 0.0 }
 0x264   :  { %v1514_v31 = vmul.f32 0.2, %v1450_v28  ;;  %v1449_v0 = vadd.f32 %v2975_v26, %v1372_v56  ;;  %v1387_v45 = vadd.f32 %v2293_v40, %v2956_v63  ;;  %1642 = vadd.xlane.f32.xlu0 %v1641_v25  ;;  %v3121_v33 = vsel %vm1479_vm7, %v1447_v7, %v1511_v34 }
 0x265   :  { %v1381_v57 = vpop.f32.mrf.mxu1  ;;  %v1575_v52 = vmul.f32 %v3121_v33, %v3121_v33  ;;  %v1576_v41 = vmul.f32 %v3117_v48, %v3117_v48  ;;  %vm1482_vm8 = vcmp.ge.f32.partialorder %v1450_v28, 0.0 }
 0x266   :  { %v1513_v55 = vmul.f32 0.2, %v1449_v0  ;;  %v1452_v42 = vadd.f32 %v2975_v26, %v1387_v45  ;;  %v1382_v44 = vadd.f32 %v1381_v57, %v2958_v14  ;;  %1645 = vadd.xlane.f32.xlu1 %v1644_v35  ;;  %vm1481_vm9 = vcmp.ge.f32.partialorder %v1449_v0, 0.0 }
 0x267   :  { %v2296_v63 = vpop.f32.mrf.mxu1  ;;  %v1647_v46 = vsel %vm28_vm0, %v1575_v52, 0.0  ;;  %v3131_v3 = vsel %vm1482_vm8, %v1450_v28, %v1514_v31  ;;  %v1650_v58 = vsel %vm28_vm0, %v1576_v41, 0.0 }
 0x268   :  { %v1516_v18 = vmul.f32 0.2, %v1452_v42  ;;  %v1451_v51 = vadd.f32 %v2975_v26, %v1382_v44  ;;  %v1397_v4 = vadd.f32 %v2296_v63, %v2960_v16  ;;  %1648 = vadd.xlane.f32.xlu0 %v1647_v46  ;;  %v3135_v54 = vsel %vm1481_vm9, %v1449_v0, %v1513_v55 }
 0x269   :  { %v1391_v13 = vpop.f32.mrf.mxu1  ;;  %v1577_v14 = vmul.f32 %v3135_v54, %v3135_v54  ;;  %v1578_v62 = vmul.f32 %v3131_v3, %v3131_v3  ;;  %vm1484_vm10 = vcmp.ge.f32.partialorder %v1452_v42, 0.0 }
 0x26a   :  { %v1515_v15 = vmul.f32 0.2, %v1451_v51  ;;  %v1454_v1 = vadd.f32 %v2975_v26, %v1397_v4  ;;  %v1392_v6 = vadd.f32 %v1391_v13, %v2962_v17  ;;  %1651 = vadd.xlane.f32.xlu1 %v1650_v58  ;;  %vm1483_vm11 = vcmp.ge.f32.partialorder %v1451_v51, 0.0 }
 0x26b   :  { %v2299_v16 = vpop.f32.mrf.mxu1  ;;  %v1653_v7 = vsel %vm28_vm0, %v1577_v14, 0.0  ;;  %v3145_v24 = vsel %vm1484_vm10, %v1452_v42, %v1516_v18  ;;  %v1656_v28 = vsel %vm28_vm0, %v1578_v62, 0.0 }
 0x26c   :  { %v1518_v37 = vmul.f32 0.2, %v1454_v1  ;;  %v1453_v11 = vadd.f32 %v2975_v26, %v1392_v6  ;;  %v1407_v27 = vadd.f32 %v2299_v16, %v2964_v20  ;;  %1654 = vadd.xlane.f32.xlu0 %v1653_v7  ;;  %v3149_v10 = vsel %vm1483_vm11, %v1451_v51, %v1515_v15 }
 0x26d   :  { %v1401_v34 = vpop.f32.mrf.mxu1  ;;  %v1579_v17 = vmul.f32 %v3149_v10, %v3149_v10  ;;  %v1580_v56 = vmul.f32 %v3145_v24, %v3145_v24  ;;  %vm1486_vm12 = vcmp.ge.f32.partialorder %v1454_v1, 0.0 }
 0x26e   :  { %v1517_v40 = vmul.f32 0.2, %v1453_v11  ;;  %v1456_v25 = vadd.f32 %v2975_v26, %v1407_v27  ;;  %v1402_v31 = vadd.f32 %v1401_v34, %v2966_v21  ;;  %1657 = vadd.xlane.f32.xlu1 %v1656_v28  ;;  %vm1485_vm13 = vcmp.ge.f32.partialorder %v1453_v11, 0.0 }
 0x26f   :  { %v2302_v20 = vpop.f32.mrf.mxu1  ;;  %v1659_v0 = vsel %vm28_vm0, %v1579_v17, 0.0  ;;  %v3159_v45 = vsel %vm1486_vm12, %v1454_v1, %v1518_v37  ;;  %v1662_v42 = vsel %vm28_vm0, %v1580_v56, 0.0 }
 0x270   :  { %v1520_v57 = vmul.f32 0.2, %v1456_v25  ;;  %v1455_v35 = vadd.f32 %v2975_v26, %v1402_v31  ;;  %v1417_v52 = vadd.f32 %v2302_v20, %v2968_v22  ;;  %1660 = vadd.xlane.f32.xlu0 %v1659_v0  ;;  %v3163_v41 = vsel %vm1485_vm13, %v1453_v11, %v1517_v40 }
 0x271   :  { %v1411_v55 = vpop.f32.mrf.mxu1  ;;  %v1581_v21 = vmul.f32 %v3163_v41, %v3163_v41  ;;  %v1582_v44 = vmul.f32 %v3159_v45, %v3159_v45  ;;  %vm1488_vm14 = vcmp.ge.f32.partialorder %v1456_v25, 0.0 }
 0x272   :  { %v1519_v63 = vmul.f32 0.2, %v1455_v35  ;;  %v1458_v46 = vadd.f32 %v2975_v26, %v1417_v52  ;;  %v1412_v18 = vadd.f32 %v1411_v55, %v2970_v23  ;;  %1663 = vadd.xlane.f32.xlu1 %v1662_v42  ;;  %vm1487_vm15 = vcmp.ge.f32.partialorder %v1455_v35, 0.0 }
 0x273   :  { %v1665_v22 = vsel %vm28_vm0, %v1581_v21, 0.0  ;;  %v3173_v51 = vsel %vm1488_vm14, %v1456_v25, %v1520_v57  ;;  %v1668_v14 = vsel %vm28_vm0, %v1582_v44, 0.0 }
 0x274   :  { %v1522_v4 = vmul.f32 0.2, %v1458_v46  ;;  %v1457_v13 = vadd.f32 %v2975_v26, %v1412_v18  ;;  %1666 = vadd.xlane.f32.xlu0 %v1665_v22  ;;  %v3176_v58 = vsel %vm1487_vm15, %v1455_v35, %v1519_v63  ;;  %v1584_v23 = vmul.f32 %v3173_v51, %v3173_v51 }
 0x275   :  { %v1583_v62 = vmul.f32 %v3176_v58, %v3176_v58  ;;  %vm1490_vm1 = vcmp.ge.f32.partialorder %v1458_v46, 0.0 }
 0x276   :  { %v1521_v15 = vmul.f32 0.2, %v1457_v13  ;;  %1669 = vadd.xlane.f32.xlu1 %v1668_v14  ;;  %vm1489_vm2 = vcmp.ge.f32.partialorder %v1457_v13, 0.0  ;;  %v3183_v1 = vsel %vm1490_vm1, %v1458_v46, %v1522_v4  ;;  %v1674_v16 = vsel %vm28_vm0, %v1584_v23, 0.0 }
 0x277   :  { %v1671_v6 = vsel %vm28_vm0, %v1583_v62, 0.0  ;;  %v1586_v37 = vmul.f32 %v3183_v1, %v3183_v1 }
 0x278   :  { %1672 = vadd.xlane.f32.xlu0 %v1671_v6  ;;  %v3186_v26 = vsel %vm1489_vm2, %v1457_v13, %v1521_v15 }
 0x279   :  { %v1585_v7 = vmul.f32 %v3186_v26, %v3186_v26  ;;  %v1680_v27 = vsel %vm28_vm0, %v1586_v37, 0.0 }
 0x27a   :  { %1675 = vadd.xlane.f32.xlu1 %v1674_v16 }
 0x27b   :  { %v1677_v11 = vsel %vm28_vm0, %v1585_v7, 0.0 }
 0x27c   :  { %1678 = vadd.xlane.f32.xlu0 %v1677_v11 }
 0x27e   :  { %1681 = vadd.xlane.f32.xlu1 %v1680_v27 }
 0x2c7   :  { %v1592_v34 = vpop.xlane.xlu0 %1591 }
 0x2c8   :  { %v1684_v28 = vmax.f32 %v1592_v34, 1e-24 }
 0x2ca   :  { %2368 = vrsqrt.f32 %v1684_v28 }
 0x2cb   :  { %v1598_v17 = vpop.xlane.xlu1 %1597  ;;  %v1589_v56 = vpop.xlane.xlu0 %1588 }
 0x2cc   :  { %v1686_v40 = vmax.f32 %v1598_v17, 1e-24  ;;  %v1683_v25 = vmax.f32 %v1589_v56, 1e-24 }
 0x2ce   :  { %2370 = vrsqrt.f32 %v1686_v40 }
 0x2cf   :  { %2372 = vrsqrt.f32 %v1683_v25  ;;  %v1595_v31 = vpop.xlane.xlu1 %1594 }
 0x2d0   :  { %v1685_v20 = vmax.f32 %v1595_v31, 1e-24 }
 0x2d1   :  { %v1601_v0 = vpop.xlane.xlu0 %1600 }
 0x2d2   :  { %2374 = vrsqrt.f32 %v1685_v20  ;;  %v1687_v57 = vmax.f32 %v1601_v0, 1e-24 }
 0x2d3   :  { %v1604_v35 = vpop.xlane.xlu1 %1603 }
 0x2d4   :  { %2376 = vrsqrt.f32 %v1687_v57  ;;  %v1688_v52 = vmax.f32 %v1604_v35, 1e-24 }
 0x2d5   :  { %v1607_v55 = vpop.xlane.xlu0 %1606 }
 0x2d6   :  { %2378 = vrsqrt.f32 %v1688_v52  ;;  %v1689_v42 = vmax.f32 %v1607_v55, 1e-24 }
 0x2d7   :  { %v2369_v21 = vpop.eup %2368  ;;  %v1610_v44 = vpop.xlane.xlu1 %1609 }
 0x2d8   :  { %v1748_v63 = vmul.f32 %v2369_v21, %v2980_v49  ;;  %2380 = vrsqrt.f32 %v1689_v42  ;;  %v1690_v46 = vmax.f32 %v1610_v44, 1e-24 }
 0x2d9   :  { %v1613_v18 = vpop.xlane.xlu0 %1612 }
 0x2da   :  { %1780 = vst.msk [vmem:[%s3361_s6 + $0x8] sm:$0xff] %vm28_vm0, %v1748_v63  ;;  %2382 = vrsqrt.f32 %v1690_v46  ;;  %v1691_v22 = vmax.f32 %v1613_v18, 1e-24 }
 0x2db   :  { %v2371_v4 = vpop.eup %2370  ;;  %v1616_v13 = vpop.xlane.xlu1 %1615 }
 0x2dc   :  { %v2373_v14 = vpop.eup %2372  ;;  %v1750_v62 = vmul.f32 %v2371_v4, %v2989_v5  ;;  %2384 = vrsqrt.f32 %v1691_v22  ;;  %v1692_v23 = vmax.f32 %v1616_v13, 1e-24 }
 0x2dd   :  { %v1747_v15 = vmul.f32 %v2373_v14, %v2986_v61  ;;  %v1619_v49 = vpop.xlane.xlu0 %1618 }
 0x2de   :  { %1782 = vst.msk [vmem:[%s3361_s6 + $0x18] sm:$0xff] %vm28_vm0, %v1750_v62  ;;  %2386 = vrsqrt.f32 %v1692_v23  ;;  %v1693_v6 = vmax.f32 %v1619_v49, 1e-24 }
 0x2df   :  { %v2375_v16 = vpop.eup %2374  ;;  %1779 = vst.msk [vmem:[%s3361_s6] sm:$0xff] %vm28_vm0, %v1747_v15  ;;  %v1622_v7 = vpop.xlane.xlu1 %1621 }
 0x2e0   :  { %v1749_v5 = vmul.f32 %v2375_v16, %v2997_v19  ;;  %2388 = vrsqrt.f32 %v1693_v6  ;;  %v1694_v37 = vmax.f32 %v1622_v7, 1e-24 }
 0x2e1   :  { %v2377_v61 = vpop.eup %2376  ;;  %v1625_v11 = vpop.xlane.xlu0 %1624 }
 0x2e2   :  { %1781 = vst.msk [vmem:[%s3361_s6 + $0x10] sm:$0xff] %vm28_vm0, %v1749_v5  ;;  %v1751_v27 = vmul.f32 %v2377_v61, %v3009_v38  ;;  %2390 = vrsqrt.f32 %v1694_v37  ;;  %v1695_v34 = vmax.f32 %v1625_v11, 1e-24 }
 0x2e3   :  { %v2379_v28 = vpop.eup %2378  ;;  %v1628_v17 = vpop.xlane.xlu1 %1627 }
 0x2e4   :  { %1783 = vst.msk [vmem:[%s3361_s6 + $0x20] sm:$0xff] %vm28_vm0, %v1751_v27  ;;  %v1752_v19 = vmul.f32 %v2379_v28, %v3005_v32  ;;  %2392 = vrsqrt.f32 %v1695_v34  ;;  %v1696_v56 = vmax.f32 %v1628_v17, 1e-24 }
 0x2e5   :  { %v2381_v40 = vpop.eup %2380  ;;  %v1631_v25 = vpop.xlane.xlu0 %1630 }
 0x2e6   :  { %1784 = vst.msk [vmem:[%s3361_s6 + $0x28] sm:$0xff] %vm28_vm0, %v1752_v19  ;;  %v1753_v38 = vmul.f32 %v2381_v40, %v3023_v60  ;;  %2394 = vrsqrt.f32 %v1696_v56  ;;  %v1697_v31 = vmax.f32 %v1631_v25, 1e-24 }
 0x2e7   :  { %v2383_v20 = vpop.eup %2382  ;;  %v1634_v0 = vpop.xlane.xlu1 %1633 }
 0x2e8   :  { %1785 = vst.msk [vmem:[%s3361_s6 + $0x30] sm:$0xff] %vm28_vm0, %v1753_v38  ;;  %v1754_v32 = vmul.f32 %v2383_v20, %v3019_v53  ;;  %2396 = vrsqrt.f32 %v1697_v31  ;;  %v1698_v57 = vmax.f32 %v1634_v0, 1e-24 }
 0x2e9   :  { %v2385_v35 = vpop.eup %2384  ;;  %v1637_v52 = vpop.xlane.xlu0 %1636 }
 0x2ea   :  { %1786 = vst.msk [vmem:[%s3361_s6 + $0x38] sm:$0xff] %vm28_vm0, %v1754_v32  ;;  %v1755_v60 = vmul.f32 %v2385_v35, %v3037_v47  ;;  %2398 = vrsqrt.f32 %v1698_v57  ;;  %v1699_v55 = vmax.f32 %v1637_v52, 1e-24 }
 0x2eb   :  { %v2387_v42 = vpop.eup %2386  ;;  %v1640_v21 = vpop.xlane.xlu1 %1639 }
 0x2ec   :  { %1787 = vst.msk [vmem:[%s3361_s6 + $0x40] sm:$0xff] %vm28_vm0, %v1755_v60  ;;  %v1756_v53 = vmul.f32 %v2387_v42, %v3033_v12  ;;  %2400 = vrsqrt.f32 %v1699_v55  ;;  %v1700_v44 = vmax.f32 %v1640_v21, 1e-24 }
 0x2ed   :  { %v2389_v63 = vpop.eup %2388  ;;  %v1643_v46 = vpop.xlane.xlu0 %1642 }
 0x2ee   :  { %1788 = vst.msk [vmem:[%s3361_s6 + $0x48] sm:$0xff] %vm28_vm0, %v1756_v53  ;;  %v1757_v47 = vmul.f32 %v2389_v63, %v3051_v9  ;;  %2402 = vrsqrt.f32 %v1700_v44  ;;  %v1701_v18 = vmax.f32 %v1643_v46, 1e-24 }
 0x2ef   :  { %v2391_v22 = vpop.eup %2390  ;;  %v1646_v4 = vpop.xlane.xlu1 %1645 }
 0x2f0   :  { %1789 = vst.msk [vmem:[%s3361_s6 + $0x50] sm:$0xff] %vm28_vm0, %v1757_v47  ;;  %v1758_v12 = vmul.f32 %v2391_v22, %v3047_v36  ;;  %2404 = vrsqrt.f32 %v1701_v18  ;;  %v1702_v13 = vmax.f32 %v1646_v4, 1e-24 }
 0x2f1   :  { %v2393_v14 = vpop.eup %2392  ;;  %v1649_v62 = vpop.xlane.xlu0 %1648 }
 0x2f2   :  { %1790 = vst.msk [vmem:[%s3361_s6 + $0x58] sm:$0xff] %vm28_vm0, %v1758_v12  ;;  %v1759_v9 = vmul.f32 %v2393_v14, %v3065_v2  ;;  %2406 = vrsqrt.f32 %v1702_v13  ;;  %v1703_v23 = vmax.f32 %v1649_v62, 1e-24 }
 0x2f3   :  { %v2395_v15 = vpop.eup %2394  ;;  %v1652_v49 = vpop.xlane.xlu1 %1651 }
 0x2f4   :  { %1791 = vst.msk [vmem:[%s3361_s6 + $0x60] sm:$0xff] %vm28_vm0, %v1759_v9  ;;  %v1760_v36 = vmul.f32 %v2395_v15, %v3061_v59  ;;  %2408 = vrsqrt.f32 %v1703_v23  ;;  %v1704_v6 = vmax.f32 %v1652_v49, 1e-24 }
 0x2f5   :  { %v2397_v16 = vpop.eup %2396  ;;  %v1655_v7 = vpop.xlane.xlu0 %1654 }
 0x2f6   :  { %1792 = vst.msk [vmem:[%s3361_s6 + $0x68] sm:$0xff] %vm28_vm0, %v1760_v36  ;;  %v1761_v2 = vmul.f32 %v2397_v16, %v3079_v30  ;;  %2410 = vrsqrt.f32 %v1704_v6  ;;  %v1705_v5 = vmax.f32 %v1655_v7, 1e-24 }
 0x2f7   :  { %v2399_v37 = vpop.eup %2398  ;;  %v1658_v61 = vpop.xlane.xlu1 %1657 }
 0x2f8   :  { %1793 = vst.msk [vmem:[%s3361_s6 + $0x70] sm:$0xff] %vm28_vm0, %v1761_v2  ;;  %v1762_v59 = vmul.f32 %v2399_v37, %v3075_v39  ;;  %2412 = vrsqrt.f32 %v1705_v5  ;;  %v1706_v11 = vmax.f32 %v1658_v61, 1e-24 }
 0x2f9   :  { %v2401_v27 = vpop.eup %2400  ;;  %v1661_v34 = vpop.xlane.xlu0 %1660 }
 0x2fa   :  { %1794 = vst.msk [vmem:[%s3361_s6 + $0x78] sm:$0xff] %vm28_vm0, %v1762_v59  ;;  %v1763_v30 = vmul.f32 %v2401_v27, %v3093_v50  ;;  %2414 = vrsqrt.f32 %v1706_v11  ;;  %v1707_v28 = vmax.f32 %v1661_v34, 1e-24 }
 0x2fb   :  { %v2403_v17 = vpop.eup %2402  ;;  %v1664_v19 = vpop.xlane.xlu1 %1663 }
 0x2fc   :  { %1795 = vst.msk [vmem:[%s3361_s6 + $0x80] sm:$0xff] %vm28_vm0, %v1763_v30  ;;  %v1764_v39 = vmul.f32 %v2403_v17, %v3089_v43  ;;  %2416 = vrsqrt.f32 %v1707_v28  ;;  %v1708_v56 = vmax.f32 %v1664_v19, 1e-24 }
 0x2fd   :  { %v2405_v40 = vpop.eup %2404  ;;  %v1667_v25 = vpop.xlane.xlu0 %1666 }
 0x2fe   :  { %1796 = vst.msk [vmem:[%s3361_s6 + $0x88] sm:$0xff] %vm28_vm0, %v1764_v39  ;;  %v1765_v50 = vmul.f32 %v2405_v40, %v3107_v8  ;;  %2418 = vrsqrt.f32 %v1708_v56  ;;  %v1709_v38 = vmax.f32 %v1667_v25, 1e-24 }
 0x2ff   :  { %v2407_v31 = vpop.eup %2406  ;;  %v1670_v20 = vpop.xlane.xlu1 %1669 }
 0x300   :  { %1797 = vst.msk [vmem:[%s3361_s6 + $0x90] sm:$0xff] %vm28_vm0, %v1765_v50  ;;  %v1766_v43 = vmul.f32 %v2407_v31, %v3103_v29  ;;  %2420 = vrsqrt.f32 %v1709_v38  ;;  %v1710_v0 = vmax.f32 %v1670_v20, 1e-24 }
 0x301   :  { %v2409_v32 = vpop.eup %2408  ;;  %v1673_v57 = vpop.xlane.xlu0 %1672 }
 0x302   :  { %1798 = vst.msk [vmem:[%s3361_s6 + $0x98] sm:$0xff] %vm28_vm0, %v1766_v43  ;;  %v1767_v8 = vmul.f32 %v2409_v32, %v3121_v33  ;;  %2422 = vrsqrt.f32 %v1710_v0  ;;  %v1711_v35 = vmax.f32 %v1673_v57, 1e-24 }
 0x303   :  { %v2411_v52 = vpop.eup %2410  ;;  %v1676_v60 = vpop.xlane.xlu1 %1675 }
 0x304   :  { %1799 = vst.msk [vmem:[%s3361_s6 + $0xa0] sm:$0xff] %vm28_vm0, %v1767_v8  ;;  %v1768_v29 = vmul.f32 %v2411_v52, %v3117_v48  ;;  %2424 = vrsqrt.f32 %v1711_v35  ;;  %v1712_v55 = vmax.f32 %v1676_v60, 1e-24 }
 0x305   :  { %v2413_v42 = vpop.eup %2412  ;;  %v1679_v21 = vpop.xlane.xlu0 %1678 }
 0x306   :  { %1800 = vst.msk [vmem:[%s3361_s6 + $0xa8] sm:$0xff] %vm28_vm0, %v1768_v29  ;;  %v1769_v33 = vmul.f32 %v2413_v42, %v3135_v54  ;;  %2426 = vrsqrt.f32 %v1712_v55  ;;  %v1713_v53 = vmax.f32 %v1679_v21, 1e-24 }
 0x307   :  { %v2415_v44 = vpop.eup %2414  ;;  %v1682_v63 = vpop.xlane.xlu1 %1681 }
 0x308   :  { %1801 = vst.msk [vmem:[%s3361_s6 + $0xb0] sm:$0xff] %vm28_vm0, %v1769_v33  ;;  %v1770_v48 = vmul.f32 %v2415_v44, %v3131_v3  ;;  %2428 = vrsqrt.f32 %v1713_v53  ;;  %v1714_v46 = vmax.f32 %v1682_v63, 1e-24 }
 0x309   :  { %v2417_v47 = vpop.eup %2416 }
 0x30a   :  { %1802 = vst.msk [vmem:[%s3361_s6 + $0xb8] sm:$0xff] %vm28_vm0, %v1770_v48  ;;  %v1771_v54 = vmul.f32 %v2417_v47, %v3149_v10  ;;  %2430 = vrsqrt.f32 %v1714_v46 }
 0x30b   :  { %v2419_v18 = vpop.eup %2418 }
 0x30c   :  { %1803 = vst.msk [vmem:[%s3361_s6 + $0xc0] sm:$0xff] %vm28_vm0, %v1771_v54  ;;  %v1772_v22 = vmul.f32 %v2419_v18, %v3145_v24 }
 0x30d   :  { %v2421_v3 = vpop.eup %2420 }
 0x30e   :  { %1804 = vst.msk [vmem:[%s3361_s6 + $0xc8] sm:$0xff] %vm28_vm0, %v1772_v22  ;;  %v1773_v4 = vmul.f32 %v2421_v3, %v3163_v41 }
 0x30f   :  { %v2423_v12 = vpop.eup %2422 }
 0x310   :  { %1805 = vst.msk [vmem:[%s3361_s6 + $0xd0] sm:$0xff] %vm28_vm0, %v1773_v4  ;;  %v1774_v10 = vmul.f32 %v2423_v12, %v3159_v45 }
 0x311   :  { %v2425_v13 = vpop.eup %2424 }
 0x312   :  { %1806 = vst.msk [vmem:[%s3361_s6 + $0xd8] sm:$0xff] %vm28_vm0, %v1774_v10  ;;  %v1775_v24 = vmul.f32 %v2425_v13, %v3176_v58 }
 0x313   :  { %v2427_v14 = vpop.eup %2426 }
 0x314   :  { %1807 = vst.msk [vmem:[%s3361_s6 + $0xe0] sm:$0xff] %vm28_vm0, %v1775_v24  ;;  %v1776_v41 = vmul.f32 %v2427_v14, %v3173_v51 }
 0x315   :  { %v2429_v62 = vpop.eup %2428 }
 0x316   :  { %1808 = vst.msk [vmem:[%s3361_s6 + $0xe8] sm:$0xff] %vm28_vm0, %v1776_v41  ;;  %v1777_v45 = vmul.f32 %v2429_v62, %v3186_v26 }
 0x317   :  { %v2431_v9 = vpop.eup %2430 }
 0x318   :  { %1809 = vst.msk [vmem:[%s3361_s6 + $0xf0] sm:$0xff] %vm28_vm0, %v1777_v45  ;;  %v1778_v58 = vmul.f32 %v2431_v9, %v3183_v1 }
 0x31a   :  { %1810 = vst.msk [vmem:[%s3361_s6 + $0xf8] sm:$0xff] %vm28_vm0, %v1778_v58 }

</bundles_post_ra>
